<compile_context>
chip_gen: v7x
topology: tpu7x:2x2x1
jax: 0.10.0
libtpu: 0.0.40
codegen_flags: <defaults>
</compile_context>

<pallas_src>
import functools

import jax
import jax.numpy as jnp
from jax.experimental import pallas as pl
from jax.experimental.pallas import tpu as pltpu


def _round_up(x, m):
    return (x + m - 1) // m * m


def _border_masks(h, w, cp, lanes):
    """Separable out-of-frame masks for every 5x5 tap, built once per step.

    Returns {(dy, dx): bool (cp, lanes)} for all non-centre taps with
    |dy|,|dx| <= 2; the 3x3 stage reuses the |dy|,|dx| <= 1 subset.  `row`/`col`
    are per-image coordinates of the flat lane axis (several images may sit
    side by side), so the circular pltpu.roll used by _im2row is masked
    correctly both at the image border and across image boundaries.
    """
    lane = jax.lax.broadcasted_iota(jnp.int32, (cp, lanes), 1)
    if (w & (w - 1)) == 0:                         # power-of-two fast paths
        col = lane & (w - 1)
        rflat = lane >> (w.bit_length() - 1)
    else:
        col = lane % w
        rflat = lane // w
    if (h & (h - 1)) == 0:
        row = rflat & (h - 1)
    else:
        row = rflat % h

    col_ok = {dx: (col >= -dx) & (col < w - dx) for dx in (-2, -1, 1, 2)}
    row_ok = {dy: (row >= -dy) & (row < h - dy) for dy in (-2, -1, 1, 2)}
    valid = {}
    for dy in range(-2, 3):
        for dx in range(-2, 3):
            if dy == 0 and dx == 0:
                continue
            if dy == 0:
                valid[(dy, dx)] = col_ok[dx]
            elif dx == 0:
                valid[(dy, dx)] = row_ok[dy]
            else:
                valid[(dy, dx)] = row_ok[dy] & col_ok[dx]
    return valid


def _im2row(src, dst_ref, valid, w, k):
    """Write the k*k shifted copies of `src` into dst_ref[0:k*k*cp] (patch matrix).

    src     : (cp, lanes) f32; channels on sublanes, flat spatial axis on lanes.
    dst_ref : (>= k*k*cp, lanes) VMEM scratch in the MXU compute dtype.
    Row ((ky*k + kx)*cp + c) holds channel c shifted by (ky - k//2, kx - k//2),
    zero outside each image's h x w frame.  Shifts are lane rotations (XLU);
    the (possibly bf16) cast is fused into each tap store, so there are no
    unaligned slices/reshapes and no separate whole-matrix astype pass.
    """
    cp, lanes = src.shape
    r = k // 2
    zeros = jnp.zeros_like(src)
    for ky in range(k):
        dy = ky - r
        for kx in range(k):
            dx = kx - r
            shift = (-(dy * w + dx)) % lanes
            shifted = src if shift == 0 else pltpu.roll(src, shift, axis=1)
            if dy == 0 and dx == 0:
                val = shifted
            else:
                m = valid[(dy, dx)]
                if m.shape[0] != cp:
                    m = m[0:cp, :]
                val = jnp.where(m, shifted, zeros)
            t = ky * k + kx
            dst_ref[t * cp:(t + 1) * cp, :] = val.astype(dst_ref.dtype)


def _ssb8_kernel(x_ref, w1_ref, w2_ref, b_ref, o_ref,
                 xp_ref, yp_ref, p_ref, *, h, w, nb, cin, cout, precision):
    """One grid step = `nb` batch images, flattened side by side on lanes.

    x_ref : (nb, Cin, H*W)        input (channels on sublanes, H*W on lanes)
    w1_ref: (Cout, 25*Cin_p)      fused 5x5 weight (4 branches + BN1 folded)
    w2_ref: (Cout, 9*Cout_p)      BasicBlock 3x3 weight (BN2 folded)
    b_ref : (Cout, 2)             [:, 0] = stage-1 bias, [:, 1] = stage-2 bias
    o_ref : (nb, Cout, H*W)       lane-dense output
    xp_ref: (Cin_p, nb*H*W)  f32  zero-padded input channels
    yp_ref: (Cout_p, nb*H*W) f32  zero-padded stage-1 activations
    p_ref : (max(25*Cin_p, 9*Cout_p), nb*H*W) compute-dtype patch matrix,
            shared (aliased) by both stages.
    """
    hw = h * w
    cin_p = xp_ref.shape[0]
    cout_p = yp_ref.shape[0]
    lanes = nb * hw

    # Border masks built once per step and reused by both im2row passes.
    valid = _border_masks(h, w, max(cin_p, cout_p), lanes)

    # Channel-padding rows are re-zeroed every step: under "parallel" megacore
    # splitting each core has its own scratch and may never see program_id 0,
    # so the "zero once at step 0" trick would be unsafe.  Cost: <= 7 rows.
    if cin_p > cin:
        xp_ref[cin:cin_p, :] = jnp.zeros((cin_p - cin, lanes), xp_ref.dtype)
    if cout_p > cout:
        yp_ref[cout:cout_p, :] = jnp.zeros((cout_p - cout, lanes), yp_ref.dtype)

    b = b_ref[...]                                   # (Cout, 2) f32

    # ---- stage 1: fused (5x1 | 1x5 | dilated 3x3 | 5x5 + bias) conv, BN1, ReLU
    for j in range(nb):
        xp_ref[0:cin, j * hw:(j + 1) * hw] = x_ref[j].astype(xp_ref.dtype)
    _im2row(xp_ref[...], p_ref, valid, w, 5)
    y = jnp.dot(w1_ref[...], p_ref[0:25 * cin_p, :],
                precision=precision, preferred_element_type=jnp.float32)
    # Write straight into the padded scratch consumed by the second im2row:
    # no (Cout, lanes) temporary and no extra copy pass.
    yp_ref[0:cout, :] = jnp.maximum(y + b[:, 0:1], 0.0)

    # ---- stage 2: BasicBlock conv3x3, BN2, ReLU
    _im2row(yp_ref[...], p_ref, valid, w, 3)
    z = jnp.dot(w2_ref[...], p_ref[0:9 * cout_p, :],
                precision=precision, preferred_element_type=jnp.float32)
    z = jnp.maximum(z + b[:, 1:2], 0.0)
    for j in range(nb):
        o_ref[j] = z[:, j * hw:(j + 1) * hw].astype(o_ref.dtype)


def skeleton_block8_forward(x, params, *, stride=1, eps=1e-5,
                            compute_dtype=jnp.float32, mxu_precision=None,
                            images_per_step=None):
    """Forward pass of SkeletonStrengtheningBlock8 (eval-mode BN, stride=1).

    compute_dtype selects the MXU operand / patch-matrix dtype (f32 or bf16);
    accumulation is always f32.  mxu_precision defaults to DEFAULT (no forced
    HIGHEST multi-pass); pass jax.lax.Precision.HIGHEST for bit-accurate f32.
    """
    assert stride == 1, "only stride=1 implemented"
    n, cin, h, w = x.shape
    cout = params["w_avg"].shape[0]
    hw = h * w
    cin_p = _round_up(cin, 8)    # pad channels to the f32 sublane tile so all
    cout_p = _round_up(cout, 8)  # in-kernel patch stores are 8-sublane aligned

    f32 = jnp.float32
    # ------------- parameter glue (tiny arrays, trace-time only) -------------
    w3x1 = params["w3x1"].astype(f32)      # (cout, cin, 5, 1)
    w1x3 = params["w1x3"].astype(f32)      # (cout, cin, 1, 5)
    w3x3 = params["w3x3"].astype(f32)      # (cout, cin, 3, 3) dilation 2
    w_avg = params["w_avg"].astype(f32)    # (cout, cin, 5, 5)
    b_avg = params["b_avg"].astype(f32)    # (cout,)

    # fuse the four linear stage-1 branches into a single 5x5 kernel
    w5 = w_avg
    w5 = w5.at[:, :, :, 2].add(w3x1[:, :, :, 0])    # (5,1) pad (2,0): centre col
    w5 = w5.at[:, :, 2, :].add(w1x3[:, :, 0, :])    # (1,5) pad (0,2): centre row
    w5 = w5.at[:, :, ::2, ::2].add(w3x3)            # 3x3 dil 2: taps {0,2,4}^2

    # fold BN1 / BN2 (inference mode) into weights & biases
    s1 = params["bn1_g"].astype(f32) / jnp.sqrt(params["bn1_v"].astype(f32) + eps)
    w5 = w5 * s1[:, None, None, None]
    bias1 = (b_avg - params["bn1_m"].astype(f32)) * s1 + params["bn1_b"].astype(f32)

    s2 = params["bn2_g"].astype(f32) / jnp.sqrt(params["bn2_v"].astype(f32) + eps)
    w3b = params["w_basic"].astype(f32) * s2[:, None, None, None]
    bias2 = params["bn2_b"].astype(f32) - params["bn2_m"].astype(f32) * s2

    # flatten to matmul form (cout, K*K*C_pad) with (ky, kx, c) ordering and
    # zero columns for the padded channels
    w5p = jnp.pad(w5, ((0, 0), (0, cin_p - cin), (0, 0), (0, 0)))
    w1mat = jnp.transpose(w5p, (0, 2, 3, 1)).reshape(cout, 25 * cin_p)
    w3bp = jnp.pad(w3b, ((0, 0), (0, cout_p - cout), (0, 0), (0, 0)))
    w2mat = jnp.transpose(w3bp, (0, 2, 3, 1)).reshape(cout, 9 * cout_p)

    w1mat = w1mat.astype(compute_dtype)
    w2mat = w2mat.astype(compute_dtype)
    b12 = jnp.stack([bias1, bias2], axis=1)          # (cout, 2), stays f32

    # NCHW -> (N, C, H*W) is a free metadata reshape: no transpose, no HBM pad.
    x_flat = x.reshape(n, cin, hw)

    # ---- images per grid step: amortise the ~0.35us step overhead for small
    # images while keeping >= 2 "parallel" steps whenever N >= 2 so both v7x
    # TensorCores get work (single-image case needs the H-tiling TODO).
    if images_per_step is None:
        nb = max(1, min(n, 2048 // max(hw, 1)))
        if n > 1:
            nb = min(nb, (n + 1) // 2)
        while n % nb:
            nb -= 1
    else:
        nb = int(images_per_step)
        assert n % nb == 0, "images_per_step must divide the batch"
    lanes = nb * hw
    p_rows = max(25 * cin_p, 9 * cout_p)   # stage-1/stage-2 patch scratch aliased

    kernel = functools.partial(_ssb8_kernel, h=h, w=w, nb=nb, cin=cin,
                               cout=cout, precision=mxu_precision)

    # ---- VMEM budget from the actual scratch + double-buffered block sizes --
    ci = jnp.dtype(compute_dtype).itemsize
    xi = x.dtype.itemsize
    scratch_bytes = (cin_p + cout_p) * lanes * 4 + p_rows * lanes * ci
    block_bytes = (nb * cin * hw * xi + nb * cout * hw * xi
                   + cout * (25 * cin_p + 9 * cout_p) * ci + cout * 2 * 4)
    vmem_needed = scratch_bytes + 2 * block_bytes + (4 << 20)
    try:
        vmem_cap = int(pltpu.get_tpu_info().vmem_capacity_bytes)
        if vmem_cap <= 0:
            vmem_cap = 64 << 20
    except Exception:
        vmem_cap = 64 << 20          # conservative (v7x: 64 MiB per TensorCore)
    vmem_limit = int(min(max(vmem_needed, 32 << 20), int(vmem_cap * 0.9)))

    cost = pl.CostEstimate(
        flops=2 * n * hw * cout * (25 * cin_p + 9 * cout_p),
        transcendentals=0,
        bytes_accessed=(x_flat.size * xi + w1mat.size * ci + w2mat.size * ci
                        + b12.size * 4 + n * cout * hw * xi))

    out_flat = pl.pallas_call(
        kernel,
        out_shape=jax.ShapeDtypeStruct((n, cout, hw), x.dtype),
        grid=(n // nb,),
        in_specs=[
            pl.BlockSpec((nb, cin, hw), lambda i: (i, 0, 0)),
            pl.BlockSpec((cout, 25 * cin_p), lambda i: (0, 0)),
            pl.BlockSpec((cout, 9 * cout_p), lambda i: (0, 0)),
            pl.BlockSpec((cout, 2), lambda i: (0, 0)),
        ],
        out_specs=pl.BlockSpec((nb, cout, hw), lambda i: (i, 0, 0)),
        scratch_shapes=[
            pltpu.VMEM((cin_p, lanes), jnp.float32),     # padded input channels
            pltpu.VMEM((cout_p, lanes), jnp.float32),    # padded stage-1 output
            pltpu.VMEM((p_rows, lanes), compute_dtype),  # shared patch matrix
        ],
        compiler_params=pltpu.CompilerParams(
            dimension_semantics=("parallel",),
            vmem_limit_bytes=vmem_limit),
        cost_estimate=cost,
    )(x_flat, w1mat, w2mat, b12)

    return out_flat.reshape(n, cout, h, w)


def _reference_forward(x, p, eps=1e-5):
    """Pure-JAX reference matching the PyTorch module (BatchNorm in eval mode)."""
    hp = jax.lax.Precision.HIGHEST

    def conv(x, w, pad, dil=(1, 1)):
        return jax.lax.conv_general_dilated(
            x, w, window_strides=(1, 1), padding=pad, rhs_dilation=dil,
            dimension_numbers=("NCHW", "OIHW", "NCHW"), precision=hp)

    def bn(z, g, b, m, v):
        inv = g / jnp.sqrt(v + eps)
        return ((z - m[None, :, None, None]) * inv[None, :, None, None]
                + b[None, :, None, None])

    ver = conv(x, p["w3x1"], ((2, 2), (0, 0)))
    hor = conv(x, p["w1x3"], ((0, 0), (2, 2)))
    sqr = conv(x, p["w3x3"], ((2, 2), (2, 2)), dil=(2, 2))
    avg = conv(x, p["w_avg"], ((2, 2), (2, 2))) + p["b_avg"][None, :, None, None]
    y = jnp.maximum(bn(ver + hor + avg + sqr,
                       p["bn1_g"], p["bn1_b"], p["bn1_m"], p["bn1_v"]), 0.0)
    z = conv(y, p["w_basic"], ((1, 1), (1, 1)))
    return jnp.maximum(bn(z, p["bn2_g"], p["bn2_b"], p["bn2_m"], p["bn2_v"]), 0.0)


if __name__ == "__main__":
    N, Cin, Cout, H, W = 2, 4, 8, 16, 16

    keys = jax.random.split(jax.random.PRNGKey(0), 15)

    def uconv(k, shape, fan_in):
        b = 1.0 / (fan_in ** 0.5)
        return jax.random.uniform(k, shape, jnp.float32, -b, b)

    params = {
        # PyTorch-convention (Cout, Cin, KH, KW) conv weights.
        "w3x1": uconv(keys[0], (Cout, Cin, 5, 1), Cin * 5),
        "w1x3": uconv(keys[1], (Cout, Cin, 1, 5), Cin * 5),
        "w3x3": uconv(keys[2], (Cout, Cin, 3, 3), Cin * 9),    # dilation 2
        "w_avg": uconv(keys[3], (Cout, Cin, 5, 5), Cin * 25),
        "b_avg": uconv(keys[4], (Cout,), Cin * 25),
        "w_basic": uconv(keys[5], (Cout, Cout, 3, 3), Cout * 9),
        # non-trivial eval-mode BatchNorm statistics / affine parameters
        "bn1_g": jax.random.uniform(keys[6], (Cout,), jnp.float32, 0.5, 1.5),
        "bn1_b": jax.random.uniform(keys[7], (Cout,), jnp.float32, -0.5, 0.5),
        "bn1_m": 0.2 * jax.random.normal(keys[8], (Cout,), jnp.float32),
        "bn1_v": jax.random.uniform(keys[9], (Cout,), jnp.float32, 0.5, 1.5),
        "bn2_g": jax.random.uniform(keys[10], (Cout,), jnp.float32, 0.5, 1.5),
        "bn2_b": jax.random.uniform(keys[11], (Cout,), jnp.float32, -0.5, 0.5),
        "bn2_m": 0.2 * jax.random.normal(keys[12], (Cout,), jnp.float32),
        "bn2_v": jax.random.uniform(keys[13], (Cout,), jnp.float32, 0.5, 1.5),
    }
    x = jax.random.normal(keys[14], (N, Cin, H, W), jnp.float32)

    ref = _reference_forward(x, params)

    # (1) f32 operands with HIGHEST matmul precision (verification only) and
    #     one image per grid step -> tight tolerance.
    out = jax.block_until_ready(
        skeleton_block8_forward(x, params,
                                mxu_precision=jax.lax.Precision.HIGHEST,
                                images_per_step=1))
    assert out.shape == ref.shape == (N, Cout, H, W)
    err = float(jnp.max(jnp.abs(out - ref)))
    assert err < 1e-4, f"f32/HIGHEST max abs err {err}"

    # (2) same numerics but 2 images flattened onto one grid step, exercising
    #     the cross-image lane masking.
    out_b = jax.block_until_ready(
        skeleton_block8_forward(x, params,
                                mxu_precision=jax.lax.Precision.HIGHEST,
                                images_per_step=2))
    err_b = float(jnp.max(jnp.abs(out_b - ref)))
    assert err_b < 1e-4, f"batched-step max abs err {err_b}"

    # (3) bf16 MXU operands + bf16 patch matrices + f32 accumulation with the
    #     default nb heuristic (v6e/v7x fast path) -> looser bound.
    out_bf16 = jax.block_until_ready(
        skeleton_block8_forward(x, params, compute_dtype=jnp.bfloat16))
    err_bf16 = float(jnp.max(jnp.abs(out_bf16 - ref)))
    assert err_bf16 < 1.5e-1, f"bf16 max abs err {err_bf16}"

    print("KERNEL_OK")
</pallas_src>

<mosaic_0001>
module attributes {stable_mosaic.version = 11 : i64} {
  func.func @_ssb8_kernel(%arg0: i32, %arg1: memref<1x4x256xf32, #tpu.memory_space<vmem>>, %arg2: memref<8x200xf32, #tpu.memory_space<vmem>>, %arg3: memref<8x72xf32, #tpu.memory_space<vmem>>, %arg4: memref<8x2xf32, #tpu.memory_space<vmem>>, %arg5: memref<1x8x256xf32, #tpu.memory_space<vmem>>, %arg6: memref<8x256xf32, #tpu.memory_space<vmem>>, %arg7: memref<8x256xf32, #tpu.memory_space<vmem>>, %arg8: memref<200x256xf32, #tpu.memory_space<vmem>>) attributes {dimension_semantics = [#tpu.dimension_semantics<parallel>], iteration_bounds = array<i64: 2>, scalar_prefetch = 0 : i64, scratch_operands = 3 : i64, tpu.core_type = #tpu.core_type<tc>, window_params = [{transform_indices = @transform_0, window_bounds = array<i64: 1, 4, 256>}, {pipeline_mode = #tpu.pipeline_mode<synchronous>, transform_indices = @transform_1, window_bounds = array<i64: 8, 200>}, {pipeline_mode = #tpu.pipeline_mode<synchronous>, transform_indices = @transform_2, window_bounds = array<i64: 8, 72>}, {pipeline_mode = #tpu.pipeline_mode<synchronous>, transform_indices = @transform_3, window_bounds = array<i64: 8, 2>}, {transform_indices = @transform_4, window_bounds = array<i64: 1, 8, 256>}]} {
    %0 = tpu.iota {dimensions = array<i32: 1>} : vector<8x256xi32>
    %c15_i32 = arith.constant 15 : i32
    %1 = vector.broadcast %c15_i32 : i32 to vector<8x256xi32>
    %2 = arith.andi %0, %1 : vector<8x256xi32>
    %c4_i32 = arith.constant 4 : i32
    %3 = vector.broadcast %c4_i32 : i32 to vector<8x256xi32>
    %4 = arith.shrsi %0, %3 : vector<8x256xi32>
    %c15_i32_0 = arith.constant 15 : i32
    %5 = vector.broadcast %c15_i32_0 : i32 to vector<8x256xi32>
    %6 = arith.andi %4, %5 : vector<8x256xi32>
    %c2_i32 = arith.constant 2 : i32
    %7 = vector.broadcast %c2_i32 : i32 to vector<8x256xi32>
    %8 = arith.cmpi sge, %2, %7 : vector<8x256xi32>
    %c18_i32 = arith.constant 18 : i32
    %9 = vector.broadcast %c18_i32 : i32 to vector<8x256xi32>
    %10 = arith.cmpi slt, %2, %9 : vector<8x256xi32>
    %11 = arith.andi %8, %10 : vector<8x256xi1>
    %c1_i32 = arith.constant 1 : i32
    %12 = vector.broadcast %c1_i32 : i32 to vector<8x256xi32>
    %13 = arith.cmpi sge, %2, %12 : vector<8x256xi32>
    %c17_i32 = arith.constant 17 : i32
    %14 = vector.broadcast %c17_i32 : i32 to vector<8x256xi32>
    %15 = arith.cmpi slt, %2, %14 : vector<8x256xi32>
    %16 = arith.andi %13, %15 : vector<8x256xi1>
    %c-1_i32 = arith.constant -1 : i32
    %17 = vector.broadcast %c-1_i32 : i32 to vector<8x256xi32>
    %18 = arith.cmpi sge, %2, %17 : vector<8x256xi32>
    %c15_i32_1 = arith.constant 15 : i32
    %19 = vector.broadcast %c15_i32_1 : i32 to vector<8x256xi32>
    %20 = arith.cmpi slt, %2, %19 : vector<8x256xi32>
    %21 = arith.andi %18, %20 : vector<8x256xi1>
    %c-2_i32 = arith.constant -2 : i32
    %22 = vector.broadcast %c-2_i32 : i32 to vector<8x256xi32>
    %23 = arith.cmpi sge, %2, %22 : vector<8x256xi32>
    %c14_i32 = arith.constant 14 : i32
    %24 = vector.broadcast %c14_i32 : i32 to vector<8x256xi32>
    %25 = arith.cmpi slt, %2, %24 : vector<8x256xi32>
    %26 = arith.andi %23, %25 : vector<8x256xi1>
    %c2_i32_2 = arith.constant 2 : i32
    %27 = vector.broadcast %c2_i32_2 : i32 to vector<8x256xi32>
    %28 = arith.cmpi sge, %6, %27 : vector<8x256xi32>
    %c18_i32_3 = arith.constant 18 : i32
    %29 = vector.broadcast %c18_i32_3 : i32 to vector<8x256xi32>
    %30 = arith.cmpi slt, %6, %29 : vector<8x256xi32>
    %31 = arith.andi %28, %30 : vector<8x256xi1>
    %c1_i32_4 = arith.constant 1 : i32
    %32 = vector.broadcast %c1_i32_4 : i32 to vector<8x256xi32>
    %33 = arith.cmpi sge, %6, %32 : vector<8x256xi32>
    %c17_i32_5 = arith.constant 17 : i32
    %34 = vector.broadcast %c17_i32_5 : i32 to vector<8x256xi32>
    %35 = arith.cmpi slt, %6, %34 : vector<8x256xi32>
    %36 = arith.andi %33, %35 : vector<8x256xi1>
    %c-1_i32_6 = arith.constant -1 : i32
    %37 = vector.broadcast %c-1_i32_6 : i32 to vector<8x256xi32>
    %38 = arith.cmpi sge, %6, %37 : vector<8x256xi32>
    %c15_i32_7 = arith.constant 15 : i32
    %39 = vector.broadcast %c15_i32_7 : i32 to vector<8x256xi32>
    %40 = arith.cmpi slt, %6, %39 : vector<8x256xi32>
    %41 = arith.andi %38, %40 : vector<8x256xi1>
    %c-2_i32_8 = arith.constant -2 : i32
    %42 = vector.broadcast %c-2_i32_8 : i32 to vector<8x256xi32>
    %43 = arith.cmpi sge, %6, %42 : vector<8x256xi32>
    %c14_i32_9 = arith.constant 14 : i32
    %44 = vector.broadcast %c14_i32_9 : i32 to vector<8x256xi32>
    %45 = arith.cmpi slt, %6, %44 : vector<8x256xi32>
    %46 = arith.andi %43, %45 : vector<8x256xi1>
    %47 = arith.andi %31, %11 : vector<8x256xi1>
    %48 = arith.andi %31, %16 : vector<8x256xi1>
    %49 = arith.andi %31, %21 : vector<8x256xi1>
    %50 = arith.andi %31, %26 : vector<8x256xi1>
    %51 = arith.andi %36, %11 : vector<8x256xi1>
    %52 = arith.andi %36, %16 : vector<8x256xi1>
    %53 = arith.andi %36, %21 : vector<8x256xi1>
    %54 = arith.andi %36, %26 : vector<8x256xi1>
    %55 = arith.andi %41, %11 : vector<8x256xi1>
    %56 = arith.andi %41, %16 : vector<8x256xi1>
    %57 = arith.andi %41, %21 : vector<8x256xi1>
    %58 = arith.andi %41, %26 : vector<8x256xi1>
    %59 = arith.andi %46, %11 : vector<8x256xi1>
    %60 = arith.andi %46, %16 : vector<8x256xi1>
    %61 = arith.andi %46, %21 : vector<8x256xi1>
    %62 = arith.andi %46, %26 : vector<8x256xi1>
    %cst = arith.constant 0.000000e+00 : f32
    %63 = vector.broadcast %cst : f32 to vector<4x256xf32>
    %c4 = arith.constant 4 : index
    %c0 = arith.constant 0 : index
    %64 = vector.load %arg6[%c4, %c0] : memref<8x256xf32, #tpu.memory_space<vmem>>, vector<4x256xf32>
    tpu.vector_store %arg6[%c4, %c0], %63 {strides = array<i32>} : memref<8x256xf32, #tpu.memory_space<vmem>>, vector<4x256xf32>,
    %c0_10 = arith.constant 0 : index
    %c0_11 = arith.constant 0 : index
    %65 = vector.load %arg4[%c0_10, %c0_11] : memref<8x2xf32, #tpu.memory_space<vmem>>, vector<8x2xf32>
    %c0_12 = arith.constant 0 : index
    %c0_13 = arith.constant 0 : index
    %c0_14 = arith.constant 0 : index
    %66 = vector.load %arg1[%c0_12, %c0_13, %c0_14] : memref<1x4x256xf32, #tpu.memory_space<vmem>>, vector<1x4x256xf32>
    %67 = vector.shape_cast %66 : vector<1x4x256xf32> to vector<4x256xf32>
    %c0_15 = arith.constant 0 : index
    %c0_16 = arith.constant 0 : index
    %68 = vector.load %arg6[%c0_15, %c0_16] : memref<8x256xf32, #tpu.memory_space<vmem>>, vector<4x256xf32>
    tpu.vector_store %arg6[%c0_15, %c0_16], %67 {strides = array<i32>} : memref<8x256xf32, #tpu.memory_space<vmem>>, vector<4x256xf32>,
    %c0_17 = arith.constant 0 : index
    %c0_18 = arith.constant 0 : index
    %69 = vector.load %arg6[%c0_17, %c0_18] : memref<8x256xf32, #tpu.memory_space<vmem>>, vector<8x256xf32>
    %cst_19 = arith.constant 0.000000e+00 : f32
    %70 = vector.broadcast %cst_19 : f32 to vector<8x256xf32>
    %c34_i32 = arith.constant 34 : i32
    %71 = tpu.dynamic_rotate %69 by %c34_i32 dim 1 : vector<8x256xf32>, i32 -> vector<8x256xf32>
    %72 = arith.select %47, %71, %70 : vector<8x256xi1>, vector<8x256xf32>
    %c0_20 = arith.constant 0 : index
    %c0_21 = arith.constant 0 : index
    %73 = vector.load %arg8[%c0_20, %c0_21] : memref<200x256xf32, #tpu.memory_space<vmem>>, vector<8x256xf32>
    tpu.vector_store %arg8[%c0_20, %c0_21], %72 {strides = array<i32>} : memref<200x256xf32, #tpu.memory_space<vmem>>, vector<8x256xf32>,
    %c33_i32 = arith.constant 33 : i32
    %74 = tpu.dynamic_rotate %69 by %c33_i32 dim 1 : vector<8x256xf32>, i32 -> vector<8x256xf32>
    %75 = arith.select %48, %74, %70 : vector<8x256xi1>, vector<8x256xf32>
    %c8 = arith.constant 8 : index
    %c0_22 = arith.constant 0 : index
    %76 = vector.load %arg8[%c8, %c0_22] : memref<200x256xf32, #tpu.memory_space<vmem>>, vector<8x256xf32>
    tpu.vector_store %arg8[%c8, %c0_22], %75 {strides = array<i32>} : memref<200x256xf32, #tpu.memory_space<vmem>>, vector<8x256xf32>,
    %c32_i32 = arith.constant 32 : i32
    %77 = tpu.dynamic_rotate %69 by %c32_i32 dim 1 : vector<8x256xf32>, i32 -> vector<8x256xf32>
    %78 = arith.select %31, %77, %70 : vector<8x256xi1>, vector<8x256xf32>
    %c16 = arith.constant 16 : index
    %c0_23 = arith.constant 0 : index
    %79 = vector.load %arg8[%c16, %c0_23] : memref<200x256xf32, #tpu.memory_space<vmem>>, vector<8x256xf32>
    tpu.vector_store %arg8[%c16, %c0_23], %78 {strides = array<i32>} : memref<200x256xf32, #tpu.memory_space<vmem>>, vector<8x256xf32>,
    %c31_i32 = arith.constant 31 : i32
    %80 = tpu.dynamic_rotate %69 by %c31_i32 dim 1 : vector<8x256xf32>, i32 -> vector<8x256xf32>
    %81 = arith.select %49, %80, %70 : vector<8x256xi1>, vector<8x256xf32>
    %c24 = arith.constant 24 : index
    %c0_24 = arith.constant 0 : index
    %82 = vector.load %arg8[%c24, %c0_24] : memref<200x256xf32, #tpu.memory_space<vmem>>, vector<8x256xf32>
    tpu.vector_store %arg8[%c24, %c0_24], %81 {strides = array<i32>} : memref<200x256xf32, #tpu.memory_space<vmem>>, vector<8x256xf32>,
    %c30_i32 = arith.constant 30 : i32
    %83 = tpu.dynamic_rotate %69 by %c30_i32 dim 1 : vector<8x256xf32>, i32 -> vector<8x256xf32>
    %84 = arith.select %50, %83, %70 : vector<8x256xi1>, vector<8x256xf32>
    %c32 = arith.constant 32 : index
    %c0_25 = arith.constant 0 : index
    %85 = vector.load %arg8[%c32, %c0_25] : memref<200x256xf32, #tpu.memory_space<vmem>>, vector<8x256xf32>
    tpu.vector_store %arg8[%c32, %c0_25], %84 {strides = array<i32>} : memref<200x256xf32, #tpu.memory_space<vmem>>, vector<8x256xf32>,
    %c18_i32_26 = arith.constant 18 : i32
    %86 = tpu.dynamic_rotate %69 by %c18_i32_26 dim 1 : vector<8x256xf32>, i32 -> vector<8x256xf32>
    %87 = arith.select %51, %86, %70 : vector<8x256xi1>, vector<8x256xf32>
    %c40 = arith.constant 40 : index
    %c0_27 = arith.constant 0 : index
    %88 = vector.load %arg8[%c40, %c0_27] : memref<200x256xf32, #tpu.memory_space<vmem>>, vector<8x256xf32>
    tpu.vector_store %arg8[%c40, %c0_27], %87 {strides = array<i32>} : memref<200x256xf32, #tpu.memory_space<vmem>>, vector<8x256xf32>,
    %c17_i32_28 = arith.constant 17 : i32
    %89 = tpu.dynamic_rotate %69 by %c17_i32_28 dim 1 : vector<8x256xf32>, i32 -> vector<8x256xf32>
    %90 = arith.select %52, %89, %70 : vector<8x256xi1>, vector<8x256xf32>
    %c48 = arith.constant 48 : index
    %c0_29 = arith.constant 0 : index
    %91 = vector.load %arg8[%c48, %c0_29] : memref<200x256xf32, #tpu.memory_space<vmem>>, vector<8x256xf32>
    tpu.vector_store %arg8[%c48, %c0_29], %90 {strides = array<i32>} : memref<200x256xf32, #tpu.memory_space<vmem>>, vector<8x256xf32>,
    %c16_i32 = arith.constant 16 : i32
    %92 = tpu.dynamic_rotate %69 by %c16_i32 dim 1 : vector<8x256xf32>, i32 -> vector<8x256xf32>
    %93 = arith.select %36, %92, %70 : vector<8x256xi1>, vector<8x256xf32>
    %c56 = arith.constant 56 : index
    %c0_30 = arith.constant 0 : index
    %94 = vector.load %arg8[%c56, %c0_30] : memref<200x256xf32, #tpu.memory_space<vmem>>, vector<8x256xf32>
    tpu.vector_store %arg8[%c56, %c0_30], %93 {strides = array<i32>} : memref<200x256xf32, #tpu.memory_space<vmem>>, vector<8x256xf32>,
    %c15_i32_31 = arith.constant 15 : i32
    %95 = tpu.dynamic_rotate %69 by %c15_i32_31 dim 1 : vector<8x256xf32>, i32 -> vector<8x256xf32>
    %96 = arith.select %53, %95, %70 : vector<8x256xi1>, vector<8x256xf32>
    %c64 = arith.constant 64 : index
    %c0_32 = arith.constant 0 : index
    %97 = vector.load %arg8[%c64, %c0_32] : memref<200x256xf32, #tpu.memory_space<vmem>>, vector<8x256xf32>
    tpu.vector_store %arg8[%c64, %c0_32], %96 {strides = array<i32>} : memref<200x256xf32, #tpu.memory_space<vmem>>, vector<8x256xf32>,
    %c14_i32_33 = arith.constant 14 : i32
    %98 = tpu.dynamic_rotate %69 by %c14_i32_33 dim 1 : vector<8x256xf32>, i32 -> vector<8x256xf32>
    %99 = arith.select %54, %98, %70 : vector<8x256xi1>, vector<8x256xf32>
    %c72 = arith.constant 72 : index
    %c0_34 = arith.constant 0 : index
    %100 = vector.load %arg8[%c72, %c0_34] : memref<200x256xf32, #tpu.memory_space<vmem>>, vector<8x256xf32>
    tpu.vector_store %arg8[%c72, %c0_34], %99 {strides = array<i32>} : memref<200x256xf32, #tpu.memory_space<vmem>>, vector<8x256xf32>,
    %c2_i32_35 = arith.constant 2 : i32
    %101 = tpu.dynamic_rotate %69 by %c2_i32_35 dim 1 : vector<8x256xf32>, i32 -> vector<8x256xf32>
    %102 = arith.select %11, %101, %70 : vector<8x256xi1>, vector<8x256xf32>
    %c80 = arith.constant 80 : index
    %c0_36 = arith.constant 0 : index
    %103 = vector.load %arg8[%c80, %c0_36] : memref<200x256xf32, #tpu.memory_space<vmem>>, vector<8x256xf32>
    tpu.vector_store %arg8[%c80, %c0_36], %102 {strides = array<i32>} : memref<200x256xf32, #tpu.memory_space<vmem>>, vector<8x256xf32>,
    %c1_i32_37 = arith.constant 1 : i32
    %104 = tpu.dynamic_rotate %69 by %c1_i32_37 dim 1 : vector<8x256xf32>, i32 -> vector<8x256xf32>
    %105 = arith.select %16, %104, %70 : vector<8x256xi1>, vector<8x256xf32>
    %c88 = arith.constant 88 : index
    %c0_38 = arith.constant 0 : index
    %106 = vector.load %arg8[%c88, %c0_38] : memref<200x256xf32, #tpu.memory_space<vmem>>, vector<8x256xf32>
    tpu.vector_store %arg8[%c88, %c0_38], %105 {strides = array<i32>} : memref<200x256xf32, #tpu.memory_space<vmem>>, vector<8x256xf32>,
    %c96 = arith.constant 96 : index
    %c0_39 = arith.constant 0 : index
    %107 = vector.load %arg8[%c96, %c0_39] : memref<200x256xf32, #tpu.memory_space<vmem>>, vector<8x256xf32>
    tpu.vector_store %arg8[%c96, %c0_39], %69 {strides = array<i32>} : memref<200x256xf32, #tpu.memory_space<vmem>>, vector<8x256xf32>,
    %c255_i32 = arith.constant 255 : i32
    %108 = tpu.dynamic_rotate %69 by %c255_i32 dim 1 : vector<8x256xf32>, i32 -> vector<8x256xf32>
    %109 = arith.select %21, %108, %70 : vector<8x256xi1>, vector<8x256xf32>
    %c104 = arith.constant 104 : index
    %c0_40 = arith.constant 0 : index
    %110 = vector.load %arg8[%c104, %c0_40] : memref<200x256xf32, #tpu.memory_space<vmem>>, vector<8x256xf32>
    tpu.vector_store %arg8[%c104, %c0_40], %109 {strides = array<i32>} : memref<200x256xf32, #tpu.memory_space<vmem>>, vector<8x256xf32>,
    %c254_i32 = arith.constant 254 : i32
    %111 = tpu.dynamic_rotate %69 by %c254_i32 dim 1 : vector<8x256xf32>, i32 -> vector<8x256xf32>
    %112 = arith.select %26, %111, %70 : vector<8x256xi1>, vector<8x256xf32>
    %c112 = arith.constant 112 : index
    %c0_41 = arith.constant 0 : index
    %113 = vector.load %arg8[%c112, %c0_41] : memref<200x256xf32, #tpu.memory_space<vmem>>, vector<8x256xf32>
    tpu.vector_store %arg8[%c112, %c0_41], %112 {strides = array<i32>} : memref<200x256xf32, #tpu.memory_space<vmem>>, vector<8x256xf32>,
    %c242_i32 = arith.constant 242 : i32
    %114 = tpu.dynamic_rotate %69 by %c242_i32 dim 1 : vector<8x256xf32>, i32 -> vector<8x256xf32>
    %115 = arith.select %55, %114, %70 : vector<8x256xi1>, vector<8x256xf32>
    %c120 = arith.constant 120 : index
    %c0_42 = arith.constant 0 : index
    %116 = vector.load %arg8[%c120, %c0_42] : memref<200x256xf32, #tpu.memory_space<vmem>>, vector<8x256xf32>
    tpu.vector_store %arg8[%c120, %c0_42], %115 {strides = array<i32>} : memref<200x256xf32, #tpu.memory_space<vmem>>, vector<8x256xf32>,
    %c241_i32 = arith.constant 241 : i32
    %117 = tpu.dynamic_rotate %69 by %c241_i32 dim 1 : vector<8x256xf32>, i32 -> vector<8x256xf32>
    %118 = arith.select %56, %117, %70 : vector<8x256xi1>, vector<8x256xf32>
    %c128 = arith.constant 128 : index
    %c0_43 = arith.constant 0 : index
    %119 = vector.load %arg8[%c128, %c0_43] : memref<200x256xf32, #tpu.memory_space<vmem>>, vector<8x256xf32>
    tpu.vector_store %arg8[%c128, %c0_43], %118 {strides = array<i32>} : memref<200x256xf32, #tpu.memory_space<vmem>>, vector<8x256xf32>,
    %c240_i32 = arith.constant 240 : i32
    %120 = tpu.dynamic_rotate %69 by %c240_i32 dim 1 : vector<8x256xf32>, i32 -> vector<8x256xf32>
    %121 = arith.select %41, %120, %70 : vector<8x256xi1>, vector<8x256xf32>
    %c136 = arith.constant 136 : index
    %c0_44 = arith.constant 0 : index
    %122 = vector.load %arg8[%c136, %c0_44] : memref<200x256xf32, #tpu.memory_space<vmem>>, vector<8x256xf32>
    tpu.vector_store %arg8[%c136, %c0_44], %121 {strides = array<i32>} : memref<200x256xf32, #tpu.memory_space<vmem>>, vector<8x256xf32>,
    %c239_i32 = arith.constant 239 : i32
    %123 = tpu.dynamic_rotate %69 by %c239_i32 dim 1 : vector<8x256xf32>, i32 -> vector<8x256xf32>
    %124 = arith.select %57, %123, %70 : vector<8x256xi1>, vector<8x256xf32>
    %c144 = arith.constant 144 : index
    %c0_45 = arith.constant 0 : index
    %125 = vector.load %arg8[%c144, %c0_45] : memref<200x256xf32, #tpu.memory_space<vmem>>, vector<8x256xf32>
    tpu.vector_store %arg8[%c144, %c0_45], %124 {strides = array<i32>} : memref<200x256xf32, #tpu.memory_space<vmem>>, vector<8x256xf32>,
    %c238_i32 = arith.constant 238 : i32
    %126 = tpu.dynamic_rotate %69 by %c238_i32 dim 1 : vector<8x256xf32>, i32 -> vector<8x256xf32>
    %127 = arith.select %58, %126, %70 : vector<8x256xi1>, vector<8x256xf32>
    %c152 = arith.constant 152 : index
    %c0_46 = arith.constant 0 : index
    %128 = vector.load %arg8[%c152, %c0_46] : memref<200x256xf32, #tpu.memory_space<vmem>>, vector<8x256xf32>
    tpu.vector_store %arg8[%c152, %c0_46], %127 {strides = array<i32>} : memref<200x256xf32, #tpu.memory_space<vmem>>, vector<8x256xf32>,
    %c226_i32 = arith.constant 226 : i32
    %129 = tpu.dynamic_rotate %69 by %c226_i32 dim 1 : vector<8x256xf32>, i32 -> vector<8x256xf32>
    %130 = arith.select %59, %129, %70 : vector<8x256xi1>, vector<8x256xf32>
    %c160 = arith.constant 160 : index
    %c0_47 = arith.constant 0 : index
    %131 = vector.load %arg8[%c160, %c0_47] : memref<200x256xf32, #tpu.memory_space<vmem>>, vector<8x256xf32>
    tpu.vector_store %arg8[%c160, %c0_47], %130 {strides = array<i32>} : memref<200x256xf32, #tpu.memory_space<vmem>>, vector<8x256xf32>,
    %c225_i32 = arith.constant 225 : i32
    %132 = tpu.dynamic_rotate %69 by %c225_i32 dim 1 : vector<8x256xf32>, i32 -> vector<8x256xf32>
    %133 = arith.select %60, %132, %70 : vector<8x256xi1>, vector<8x256xf32>
    %c168 = arith.constant 168 : index
    %c0_48 = arith.constant 0 : index
    %134 = vector.load %arg8[%c168, %c0_48] : memref<200x256xf32, #tpu.memory_space<vmem>>, vector<8x256xf32>
    tpu.vector_store %arg8[%c168, %c0_48], %133 {strides = array<i32>} : memref<200x256xf32, #tpu.memory_space<vmem>>, vector<8x256xf32>,
    %c224_i32 = arith.constant 224 : i32
    %135 = tpu.dynamic_rotate %69 by %c224_i32 dim 1 : vector<8x256xf32>, i32 -> vector<8x256xf32>
    %136 = arith.select %46, %135, %70 : vector<8x256xi1>, vector<8x256xf32>
    %c176 = arith.constant 176 : index
    %c0_49 = arith.constant 0 : index
    %137 = vector.load %arg8[%c176, %c0_49] : memref<200x256xf32, #tpu.memory_space<vmem>>, vector<8x256xf32>
    tpu.vector_store %arg8[%c176, %c0_49], %136 {strides = array<i32>} : memref<200x256xf32, #tpu.memory_space<vmem>>, vector<8x256xf32>,
    %c223_i32 = arith.constant 223 : i32
    %138 = tpu.dynamic_rotate %69 by %c223_i32 dim 1 : vector<8x256xf32>, i32 -> vector<8x256xf32>
    %139 = arith.select %61, %138, %70 : vector<8x256xi1>, vector<8x256xf32>
    %c184 = arith.constant 184 : index
    %c0_50 = arith.constant 0 : index
    %140 = vector.load %arg8[%c184, %c0_50] : memref<200x256xf32, #tpu.memory_space<vmem>>, vector<8x256xf32>
    tpu.vector_store %arg8[%c184, %c0_50], %139 {strides = array<i32>} : memref<200x256xf32, #tpu.memory_space<vmem>>, vector<8x256xf32>,
    %c222_i32 = arith.constant 222 : i32
    %141 = tpu.dynamic_rotate %69 by %c222_i32 dim 1 : vector<8x256xf32>, i32 -> vector<8x256xf32>
    %142 = arith.select %62, %141, %70 : vector<8x256xi1>, vector<8x256xf32>
    %c192 = arith.constant 192 : index
    %c0_51 = arith.constant 0 : index
    %143 = vector.load %arg8[%c192, %c0_51] : memref<200x256xf32, #tpu.memory_space<vmem>>, vector<8x256xf32>
    tpu.vector_store %arg8[%c192, %c0_51], %142 {strides = array<i32>} : memref<200x256xf32, #tpu.memory_space<vmem>>, vector<8x256xf32>,
    %c0_52 = arith.constant 0 : index
    %c0_53 = arith.constant 0 : index
    %144 = vector.load %arg2[%c0_52, %c0_53] : memref<8x200xf32, #tpu.memory_space<vmem>>, vector<8x200xf32>
    %c0_54 = arith.constant 0 : index
    %c0_55 = arith.constant 0 : index
    %145 = vector.load %arg8[%c0_54, %c0_55] : memref<200x256xf32, #tpu.memory_space<vmem>>, vector<200x256xf32>
    %cst_56 = arith.constant dense<0.000000e+00> : vector<8x256xf32>
    %146 = tpu.matmul %144, %145, %cst_56 {dimension_numbers = #tpu.dot_dimension_numbers<[1], [0], [0], [1], [0, 0, 1, 1], [], []>, precision = #tpu.contract_precision<fp32>} : vector<8x200xf32>, vector<200x256xf32>, vector<8x256xf32> -> vector<8x256xf32>
    %147 = vector.extract_strided_slice %65 {offsets = [0, 0], sizes = [8, 1], strides = [1, 1]} : vector<8x2xf32> to vector<8x1xf32>
    %148 = vector.broadcast %147 : vector<8x1xf32> to vector<8x256xf32>
    %149 = arith.addf %146, %148 : vector<8x256xf32>
    %cst_57 = arith.constant 0.000000e+00 : f32
    %150 = vector.broadcast %cst_57 : f32 to vector<8x256xf32>
    %151 = arith.maximumf %149, %150 : vector<8x256xf32>
    %c0_58 = arith.constant 0 : index
    %c0_59 = arith.constant 0 : index
    %152 = vector.load %arg7[%c0_58, %c0_59] : memref<8x256xf32, #tpu.memory_space<vmem>>, vector<8x256xf32>
    tpu.vector_store %arg7[%c0_58, %c0_59], %151 {strides = array<i32>} : memref<8x256xf32, #tpu.memory_space<vmem>>, vector<8x256xf32>,
    %c0_60 = arith.constant 0 : index
    %c0_61 = arith.constant 0 : index
    %153 = vector.load %arg7[%c0_60, %c0_61] : memref<8x256xf32, #tpu.memory_space<vmem>>, vector<8x256xf32>
    %cst_62 = arith.constant 0.000000e+00 : f32
    %154 = vector.broadcast %cst_62 : f32 to vector<8x256xf32>
    %c17_i32_63 = arith.constant 17 : i32
    %155 = tpu.dynamic_rotate %153 by %c17_i32_63 dim 1 : vector<8x256xf32>, i32 -> vector<8x256xf32>
    %156 = arith.select %52, %155, %154 : vector<8x256xi1>, vector<8x256xf32>
    %c0_64 = arith.constant 0 : index
    %c0_65 = arith.constant 0 : index
    %157 = vector.load %arg8[%c0_64, %c0_65] : memref<200x256xf32, #tpu.memory_space<vmem>>, vector<8x256xf32>
    tpu.vector_store %arg8[%c0_64, %c0_65], %156 {strides = array<i32>} : memref<200x256xf32, #tpu.memory_space<vmem>>, vector<8x256xf32>,
    %c16_i32_66 = arith.constant 16 : i32
    %158 = tpu.dynamic_rotate %153 by %c16_i32_66 dim 1 : vector<8x256xf32>, i32 -> vector<8x256xf32>
    %159 = arith.select %36, %158, %154 : vector<8x256xi1>, vector<8x256xf32>
    %c8_67 = arith.constant 8 : index
    %c0_68 = arith.constant 0 : index
    %160 = vector.load %arg8[%c8_67, %c0_68] : memref<200x256xf32, #tpu.memory_space<vmem>>, vector<8x256xf32>
    tpu.vector_store %arg8[%c8_67, %c0_68], %159 {strides = array<i32>} : memref<200x256xf32, #tpu.memory_space<vmem>>, vector<8x256xf32>,
    %c15_i32_69 = arith.constant 15 : i32
    %161 = tpu.dynamic_rotate %153 by %c15_i32_69 dim 1 : vector<8x256xf32>, i32 -> vector<8x256xf32>
    %162 = arith.select %53, %161, %154 : vector<8x256xi1>, vector<8x256xf32>
    %c16_70 = arith.constant 16 : index
    %c0_71 = arith.constant 0 : index
    %163 = vector.load %arg8[%c16_70, %c0_71] : memref<200x256xf32, #tpu.memory_space<vmem>>, vector<8x256xf32>
    tpu.vector_store %arg8[%c16_70, %c0_71], %162 {strides = array<i32>} : memref<200x256xf32, #tpu.memory_space<vmem>>, vector<8x256xf32>,
    %c1_i32_72 = arith.constant 1 : i32
    %164 = tpu.dynamic_rotate %153 by %c1_i32_72 dim 1 : vector<8x256xf32>, i32 -> vector<8x256xf32>
    %165 = arith.select %16, %164, %154 : vector<8x256xi1>, vector<8x256xf32>
    %c24_73 = arith.constant 24 : index
    %c0_74 = arith.constant 0 : index
    %166 = vector.load %arg8[%c24_73, %c0_74] : memref<200x256xf32, #tpu.memory_space<vmem>>, vector<8x256xf32>
    tpu.vector_store %arg8[%c24_73, %c0_74], %165 {strides = array<i32>} : memref<200x256xf32, #tpu.memory_space<vmem>>, vector<8x256xf32>,
    %c32_75 = arith.constant 32 : index
    %c0_76 = arith.constant 0 : index
    %167 = vector.load %arg8[%c32_75, %c0_76] : memref<200x256xf32, #tpu.memory_space<vmem>>, vector<8x256xf32>
    tpu.vector_store %arg8[%c32_75, %c0_76], %153 {strides = array<i32>} : memref<200x256xf32, #tpu.memory_space<vmem>>, vector<8x256xf32>,
    %c255_i32_77 = arith.constant 255 : i32
    %168 = tpu.dynamic_rotate %153 by %c255_i32_77 dim 1 : vector<8x256xf32>, i32 -> vector<8x256xf32>
    %169 = arith.select %21, %168, %154 : vector<8x256xi1>, vector<8x256xf32>
    %c40_78 = arith.constant 40 : index
    %c0_79 = arith.constant 0 : index
    %170 = vector.load %arg8[%c40_78, %c0_79] : memref<200x256xf32, #tpu.memory_space<vmem>>, vector<8x256xf32>
    tpu.vector_store %arg8[%c40_78, %c0_79], %169 {strides = array<i32>} : memref<200x256xf32, #tpu.memory_space<vmem>>, vector<8x256xf32>,
    %c241_i32_80 = arith.constant 241 : i32
    %171 = tpu.dynamic_rotate %153 by %c241_i32_80 dim 1 : vector<8x256xf32>, i32 -> vector<8x256xf32>
    %172 = arith.select %56, %171, %154 : vector<8x256xi1>, vector<8x256xf32>
    %c48_81 = arith.constant 48 : index
    %c0_82 = arith.constant 0 : index
    %173 = vector.load %arg8[%c48_81, %c0_82] : memref<200x256xf32, #tpu.memory_space<vmem>>, vector<8x256xf32>
    tpu.vector_store %arg8[%c48_81, %c0_82], %172 {strides = array<i32>} : memref<200x256xf32, #tpu.memory_space<vmem>>, vector<8x256xf32>,
    %c240_i32_83 = arith.constant 240 : i32
    %174 = tpu.dynamic_rotate %153 by %c240_i32_83 dim 1 : vector<8x256xf32>, i32 -> vector<8x256xf32>
    %175 = arith.select %41, %174, %154 : vector<8x256xi1>, vector<8x256xf32>
    %c56_84 = arith.constant 56 : index
    %c0_85 = arith.constant 0 : index
    %176 = vector.load %arg8[%c56_84, %c0_85] : memref<200x256xf32, #tpu.memory_space<vmem>>, vector<8x256xf32>
    tpu.vector_store %arg8[%c56_84, %c0_85], %175 {strides = array<i32>} : memref<200x256xf32, #tpu.memory_space<vmem>>, vector<8x256xf32>,
    %c239_i32_86 = arith.constant 239 : i32
    %177 = tpu.dynamic_rotate %153 by %c239_i32_86 dim 1 : vector<8x256xf32>, i32 -> vector<8x256xf32>
    %178 = arith.select %57, %177, %154 : vector<8x256xi1>, vector<8x256xf32>
    %c64_87 = arith.constant 64 : index
    %c0_88 = arith.constant 0 : index
    %179 = vector.load %arg8[%c64_87, %c0_88] : memref<200x256xf32, #tpu.memory_space<vmem>>, vector<8x256xf32>
    tpu.vector_store %arg8[%c64_87, %c0_88], %178 {strides = array<i32>} : memref<200x256xf32, #tpu.memory_space<vmem>>, vector<8x256xf32>,
    %c0_89 = arith.constant 0 : index
    %c0_90 = arith.constant 0 : index
    %180 = vector.load %arg3[%c0_89, %c0_90] : memref<8x72xf32, #tpu.memory_space<vmem>>, vector<8x72xf32>
    %c0_91 = arith.constant 0 : index
    %c0_92 = arith.constant 0 : index
    %181 = vector.load %arg8[%c0_91, %c0_92] : memref<200x256xf32, #tpu.memory_space<vmem>>, vector<72x256xf32>
    %cst_93 = arith.constant dense<0.000000e+00> : vector<8x256xf32>
    %182 = tpu.matmul %180, %181, %cst_93 {dimension_numbers = #tpu.dot_dimension_numbers<[1], [0], [0], [1], [0, 0, 1, 1], [], []>, precision = #tpu.contract_precision<fp32>} : vector<8x72xf32>, vector<72x256xf32>, vector<8x256xf32> -> vector<8x256xf32>
    %183 = vector.extract_strided_slice %65 {offsets = [0, 1], sizes = [8, 1], strides = [1, 1]} : vector<8x2xf32> to vector<8x1xf32>
    %184 = vector.broadcast %183 : vector<8x1xf32> to vector<8x256xf32>
    %185 = arith.addf %182, %184 : vector<8x256xf32>
    %cst_94 = arith.constant 0.000000e+00 : f32
    %186 = vector.broadcast %cst_94 : f32 to vector<8x256xf32>
    %187 = arith.maximumf %185, %186 : vector<8x256xf32>
    %c0_95 = arith.constant 0 : index
    %c0_96 = arith.constant 0 : index
    %c0_97 = arith.constant 0 : index
    %188 = vector.load %arg5[%c0_95, %c0_96, %c0_97] : memref<1x8x256xf32, #tpu.memory_space<vmem>>, vector<1x8x256xf32>
    %189 = vector.shape_cast %188 : vector<1x8x256xf32> to vector<8x256xf32>
    %190 = vector.shape_cast %187 : vector<8x256xf32> to vector<1x8x256xf32>
    tpu.vector_store %arg5[%c0_95, %c0_96, %c0_97], %190 {strides = array<i32>} : memref<1x8x256xf32, #tpu.memory_space<vmem>>, vector<1x8x256xf32>,
    return
  }
  func.func @transform_0(%arg0: i32) -> (i32, i32, i32) {
    %c0_i32 = arith.constant 0 : i32
    %c0_i32_0 = arith.constant 0 : i32
    %c0_i32_1 = arith.constant 0 : i32
    return %arg0, %c0_i32, %c0_i32_0 : i32, i32, i32
  }
  func.func @transform_1(%arg0: i32) -> (i32, i32) {
    %c0_i32 = arith.constant 0 : i32
    %c0_i32_0 = arith.constant 0 : i32
    %c0_i32_1 = arith.constant 0 : i32
    return %c0_i32, %c0_i32_0 : i32, i32
  }
  func.func @transform_2(%arg0: i32) -> (i32, i32) {
    %c0_i32 = arith.constant 0 : i32
    %c0_i32_0 = arith.constant 0 : i32
    %c0_i32_1 = arith.constant 0 : i32
    return %c0_i32, %c0_i32_0 : i32, i32
  }
  func.func @transform_3(%arg0: i32) -> (i32, i32) {
    %c0_i32 = arith.constant 0 : i32
    %c0_i32_0 = arith.constant 0 : i32
    %c0_i32_1 = arith.constant 0 : i32
    return %c0_i32, %c0_i32_0 : i32, i32
  }
  func.func @transform_4(%arg0: i32) -> (i32, i32, i32) {
    %c0_i32 = arith.constant 0 : i32
    %c0_i32_0 = arith.constant 0 : i32
    %c0_i32_1 = arith.constant 0 : i32
    return %arg0, %c0_i32, %c0_i32_0 : i32, i32, i32
  }
}

</mosaic_0001>

<bundles_post_ra>
// kernel: tpu_custom_call.1
= control target key start
LH: loop header
LB: loop body
LE: loop exit
PB: predicated region body
PF: predicated region fallthrough
CT: control target
= control target key end

     0   :  { %9 = vsyncpa [#allocation6], 0  ;;  %s5197_s0 = inlined_call_operand.hbm [shape: f32[2,4,256], index: 0, kind: input, shape index: {}]   ;;  %s5198_s1 = inlined_call_operand.hbm [shape: f32[8,200], index: 1, kind: input, shape index: {}]   ;;  %s5199_s2 = inlined_call_operand.vmem [shape: f32[8,72], index: 2, kind: input, shape index: {}]   ;;  %s5200_s3 = inlined_call_operand.vmem [shape: f32[8,2], index: 3, kind: input, shape index: {}]   ;;  %s5201_s4 = inlined_call_operand.hbm [shape: f32[2,8,256], index: 4, kind: output, shape index: {}]  }
   0x1   :  { %11 = vsyncpa [#allocation6 + $0x1], 0 }
   0x2   :  { %12 = vsyncpa [#allocation9], 0 }
   0x3   :  { %13 = vsyncpa [#allocation7], 0 }
   0x4   :  { %15 = vsyncpa [#allocation7 + $0x1], 0  ;;  %s3340_s15 = smov 0   ;;  %s3342_s16 = smov 0  }
   0x5   :  { %s3344_s17 = smov 0   ;;  %s3346_s18 = smov 0  }
   0x6 LB: > { %s3361_s19 = sadd.s32 4294967295, %s3283_s18   ;;  %s2642_s20 = sadd.s32 4294967294, %s3283_s18   ;;  %s3283_s18 = sphi %s3346_s18, %s5755_s18   ;;  %s3279_s17 = sphi %s3344_s17, %s5754_s17   ;;  %s3275_s16 = sphi %s3342_s16, %s5753_s16   ;;  %s3271_s15 = sphi %s3340_s15, %s5752_s15  }
   0x7   : > { %p41_p0 = scmp.ne.s32.totalorder %s3275_s16, %s3271_s15  ;;  %p5202_p1 = scmp.eq.s32.totalorder %s3361_s19, 0 }
   0x8   : > { %p134_p3 = scmp.eq.s32.totalorder %s2642_s20, 1  ;;  %p2643_p5 = scmp.ge.s32.totalorder %s3283_s18, 1 }
   0x9   : > { %p3370_p4 = por %p5202_p1, %p41_p0  ;;  %p141_p7 = scmp.lt.s32.totalorder %s3283_s18, 3 }
   0xa   : > { %p3375_p6 = por %p134_p3, %p41_p0  ;;  %s3285_s24 = smov [#allocation8]  }
   0xb   : > { %s5349_s21 = scalar_select %p3370_p4, 1, 0 }
   0xc   : > { %s5350_s22 = scalar_select %p3375_p6, 1, 0 }
   0xd   : > { %p3380_p8 = pnand %p2643_p5, %p141_p7  ;;  %s154_s25 = sshll.u32 %s3285_s24, 4  ;;  %s155_s25 = int_to_ptr.vmem [resolvable:$true] %s154_s25 }
   0xe   : > { %s3388_s26 = sadd.s32 1, %s3283_s18   ;;  %s28_s30 = sadd.s32 1, %s3279_s17 }
   0xf   : > { %s5351_s23 = scalar_select %p3380_p8, 1, 0 }
  0x10   : > { %p3076_p10 = pneg %p3380_p8  ;;  %s25_s28 = ssub.s32 %s3283_s18, %s3388_s26 }
  0x11   : > { %p3398_p12 = scmp.eq.s32.totalorder %s25_s28, 0  ;;  %s3155_s7 = scalar_lea.hbm %s5198_s1, 256 }
  0x12   : > { %p3392_p11 = pnand %p3076_p10, %p5202_p1  ;;  %p3156_p0 = scmp.ne.s32.totalorder %s5198_s1, %s3155_s7 }
  0x13   : > { %s5353_s29 = scalar_select %p3398_p12, 1, 0 }
  0x14   : > { %p3157_p3 = pneg %p3392_p11  ;;  %p3162_p10 = scmp.lt.u32.totalorder %s3155_s7, %s5198_s1 }
  0x16   : > { %p3158_p5 = pnand %p3157_p3, %p3156_p0 }
  0x18   : > { %p3159_p7 = pneg %p3158_p5 }
  0x1a   : > { %p3164_p9 = pnand %p3162_p10, %p3159_p7 }
  0x1c   : > { %3167 = shalt.err (!%p3164_p9)
}
  0x1d   : > { %s3168_s12 = scalar_lea.vmem %s155_s25, 256  ;;  %p3176_p6 = scmp.lt.s32.totalorder %s155_s25, %s155_s25 }
  0x1e   : > { %p3169_p1 = scmp.ne.s32.totalorder %s155_s25, %s3168_s12  ;;  %p3177_p4 = scmp.lt.s32.totalorder %s3168_s12, %s3168_s12 }
  0x20   : > { %p3171_p2 = pnand %p3169_p1, %p3157_p3  ;;  %p3178_p8 = por %p3177_p4, %p3176_p6 }
  0x22   : > { %p3172_p13 = pneg %p3171_p2 }
  0x24   : > { %p3179_p12 = pnand %p3178_p8, %p3172_p13 }
  0x26   : > { %3182 = shalt.err (!%p3179_p12)
}
  0x27   : > { %3079 = dma.hbm_to_vmem [thread:$0]  (!%p3392_p11), %s5198_s1, 256, %s155_s25, [#allocation9]  }
  0x28   : > { %p5354_p1 = scmp.ne.s32.totalorder %s5353_s29, 0  ;;  %p36_p2 = scmp.eq.s32.totalorder %s3283_s18, 0 }
  0x29   : > { %p5355_p4 = scmp.ne.s32.totalorder %s3279_s17, %s3275_s16  ;;  %p5356_p6 = scmp.eq.s32.totalorder %s3361_s19, 1 }
  0x2a   : > { %s3424_s20 = scalar_select %p5354_p1, %s3279_s17, %s28_s30  }
  0x2b   : > { %p3432_p8 = por %p5356_p6, %p5355_p4  ;;  %p3089_p9 = scmp.lt.s32.totalorder %s3283_s18, 2 }
  0x2c   : > { %s171_s27 = sand.u32 1, %s3279_s17   ;;  %p5358_p12 = pmov %p5355_p4 }
  0x2d   : > { %s2646_s28 = sshll.u32 %s171_s27, 3  ;;  %s2658_s5 = sshll.u32 %s3283_s18, 7 }
  0x2e   : > { %p37_p13 = por %p36_p2, %p5358_p12  ;;  %s3445_s25 = scalar_lea.hbm %s5197_s0, %s2658_s5 }
  0x2f   : > { %s175_s29 = scalar_lea.vmem [#allocation5], %s2646_s28  ;;  %s172_s9 = scalar_lea.sflag [#allocation6], %s171_s27 }
  0x30   : > { %s183_s30 = sshll.u32 %s175_s29, 4  ;;  %p3447_p11 = pnand %p3089_p9, %p37_p13  ;;  %s3451_s30 = int_to_ptr.vmem [resolvable:$true] %s183_s30 }
  0x31   : > { %s3183_s10 = scalar_lea.hbm %s3445_s25, 128  ;;  %s3188_s13 = scalar_lea.hbm %s5197_s0, 256 }
  0x32   : > { %p3184_p0 = scmp.ne.s32.totalorder %s3445_s25, %s3183_s10  ;;  %p3185_p3 = pneg %p3447_p11 }
  0x33   : > { %p3189_p10 = scmp.lt.u32.totalorder %s3445_s25, %s5197_s0  ;;  %p3190_p1 = scmp.lt.u32.totalorder %s3188_s13, %s3183_s10 }
  0x34   : > { %p3186_p5 = pnand %p3185_p3, %p3184_p0  ;;  %p3192_p4 = scmp.lt.u32.totalorder %s3183_s10, %s3445_s25 }
  0x35   : > { %p3191_p2 = por %p3190_p1, %p3189_p10 }
  0x36   : > { %p3187_p7 = pneg %p3186_p5 }
  0x37   : > { %p3193_p6 = por %p3192_p4, %p3191_p2 }
  0x39   : > { %p3194_p9 = pnand %p3193_p6, %p3187_p7 }
  0x3b   : > { %3197 = shalt.err (!%p3194_p9)
}
  0x3c   : > { %s3198_s27 = scalar_lea.vmem %s3451_s30, 128  ;;  %s3286_s5 = smov [#allocation5]  }
  0x3d   : > { %p3199_p12 = scmp.ne.s32.totalorder %s3451_s30, %s3198_s27  ;;  %s3203_s6 = sshll.u32 %s3286_s5, 4  ;;  %s3204_s6 = int_to_ptr.vmem [resolvable:$false] %s3203_s6 }
  0x3e   : > { %s3205_s7 = scalar_lea.vmem %s3204_s6, 256  ;;  %p3206_p5 = scmp.lt.s32.totalorder %s3451_s30, %s3204_s6 }
  0x3f   : > { %p3201_p13 = pnand %p3199_p12, %p3185_p3  ;;  %p3207_p10 = scmp.lt.s32.totalorder %s3205_s7, %s3198_s27 }
  0x41   : > { %p3202_p0 = pneg %p3201_p13  ;;  %p3208_p1 = por %p3207_p10, %p3206_p5 }
  0x43   : > { %p3209_p2 = pnand %p3208_p1, %p3202_p0 }
  0x45   : > { %3212 = shalt.err (!%p3209_p2)
}
  0x46   : > { %3083 = dma.hbm_to_vmem [thread:$0]  (!%p3447_p11), %s3445_s25, 128, %s3451_s30, %s172_s9  }
  0x47   : > { %p5360_p7 = scmp.ne.s32.totalorder %s5351_s23, 0 }
  0x49   : > { %192 = sbr.rel (%p5360_p7) target bundleno = 1171 (0x493), region = 36 }
  0x50   : > { %s3481_s29 = sand.u32 1, %s3275_s16   ;;  %p5361_p3 = scmp.ne.s32.totalorder %s5349_s21, 0 }
  0x51   : > { %s2650_s10 = sshll.u32 %s3481_s29, 3  ;;  %s195_s11 = scalar_lea.sflag [#allocation6], %s3481_s29 }
  0x52   : > { %s198_s12 = scalar_lea.vmem [#allocation5], %s2650_s10 }
  0x53   : > { %3258 = dma.done.wait (%p5361_p3), %s195_s11, 128  }
  0x54   : > { %3260 = vsyncadd (%p5361_p3), %s195_s11, 4294967168  ;;  %p5362_p4 = scmp.eq.s32.totalorder %s3361_s19, 0 }
  0x56   : > { %3262 = dma.done.wait (%p5362_p4), [#allocation9], 256   ;;  %p5363_p11 = pmov %p5362_p4 }
  0x57   : > { %v5215_v0 = vmov 0.0   ;;  %v319_v1 = vld [vmem:[%s198_s12] sm:$0xff]  ;;  %s3288_s23 = smov 33   ;;  %s3289_s21 = smov 34   ;;  %v594_v5 = vld [vmem:[#allocation8 + $0x8] sm:$0xff]  ;;  %vm5205_vm0 = vcmask 588800   ;;  %v227_v12 = vlaneseq }
  0x58   : > { %3264 = vsyncadd (%p5363_p11), [#allocation9], 4294967040  ;;  %316 = vst [vmem:[#allocation2] sm:$0xf0] %v5215_v0  ;;  %v321_v2 = vcombine.high %v319_v1, %v319_v1  ;;  %s3290_s25 = smov 32   ;;  %s3291_s30 = smov 31  }
  0x59   : > { %317 = vst [vmem:[#allocation2 + $0x8] sm:$0xf0] %v5215_v0  ;;  %323 = vst [vmem:[#allocation2] sm:$0xf] %v319_v1  ;;  %s3292_s8 = smov 30   ;;  %s3293_s9 = smov 18  }
  0x5a   : > { %324 = vst [vmem:[#allocation2 + $0x8] sm:$0xf] %v321_v2  ;;  %s3294_s13 = smov 17   ;;  %s3295_s14 = smov 16   ;;  %v652_v6 = vsel %vm5205_vm0, %v594_v5, 0  ;;  %v3574_v13 = vand.u32 127, %v227_v12 }
  0x5b   : > { %s3296_s28 = smov 15   ;;  %s3297_s27 = smov 14   ;;  %v3562_v7 = vand.u32 4294901760, %v652_v6  ;;  %v593_v29 = vld [vmem:[#allocation8] sm:$0xff]  ;;  %v5382_v48 = vmov 0  ;;  %v5386_v54 = vmov 0 }
  0x5c   : > { %s3298_s5 = smov 2   ;;  %s3299_s6 = smov 1   ;;  %5364 = vst [vmem:[#allocation14_spill] sm:$0xff] %v3574_v13  ;;  %v229_v14 = vadd.s32 128, %v3574_v13  ;;  %v232_v15 = vshra.s32 %v3574_v13, 4  ;;  %v3583_v23 = vand.u32 15, %v3574_v13 }
  0x5d   : > { %s3300_s7 = smov 127   ;;  %s3301_s10 = smov 126   ;;  %v3567_v8 = vsub.f32 %v652_v6, %v3562_v7  ;;  %vm342_vm9 = vcmp.lt.s32.totalorder %v3574_v13, 33  ;;  %vm5210_vm13 = vcmp.lt.s32.totalorder %v3574_v13, 31  ;;  %vm353_vm15 = vcmp.lt.s32.totalorder %v3574_v13, 32 }
  0x5e   : > { %s3302_s11 = smov 114   ;;  %s3303_s12 = smov 113   ;;  %v233_v16 = vshra.s32 %v229_v14, 4  ;;  %v3578_v19 = vand.u32 15, %v232_v15  ;;  %5365 = vst [vmem:[#allocation15_spill] sm:$0xff] %v3583_v23  ;;  %v3585_v24 = vand.u32 15, %v229_v14 }
  0x5f   : > { %v5217_v9 = vand.u32 4294901760, %v3567_v8  ;;  %1274 = vmatprep.mubr.f32.mxu0 %v3567_v8  ;;  %vm5208_vm5 = vcmp.ge.s32.totalorder %v3583_v23, 1  ;;  %vm5207_vm10 = vcmp.lt.s32.totalorder %v3583_v23, 15  ;;  %vm331_vm0 = vcmp.lt.s32.totalorder %v3574_v13, 34 }
  0x60   : > { %v3495_v3 = vld [vmem:[#allocation2] sm:$0xff]  ;;  %v3580_v20 = vand.u32 15, %v233_v16  ;;  %5366 = vst [vmem:[#allocation16_spill] sm:$0xff] %v3585_v24  ;;  %vm260_vm1 = vcmp.ge.s32.totalorder %v3578_v19, 2  ;;  %vm262_vm2 = vcmp.lt.s32.totalorder %v3578_v19, 18  ;;  %vm5206_vm7 = vcmp.ge.s32.totalorder %v3585_v24, 1 }
  0x61   : > { %338 = vrot.lane.b32.xlu1 %v3495_v3, %s3288_s23  ;;  %327 = vrot.lane.b32.xlu0 %v3495_v3, %s3289_s21  ;;  %v3499_v4 = vld [vmem:[#allocation2 + $0x8] sm:$0xff]  ;;  %v771_v10 = vsub.f32 %v3567_v8, %v5217_v9  ;;  %vm3592_vm6 = vmand %vm260_vm1, %vm262_vm2  ;;  %vm5209_vm12 = vcmp.lt.s32.totalorder %v3585_v24, 15  ;;  %vm5211_vm1 = vcmp.ge.s32.totalorder %v3583_v23, 2  ;;  %v3632_v35 = vand.u32 4294901760, %v593_v29 }
  0x62   : > { %vm261_vm3 = vcmp.ge.s32.totalorder %v3580_v20, 2  ;;  %vm263_vm4 = vcmp.lt.s32.totalorder %v3580_v20, 18  ;;  %vm3607_vm11 = vmand %vm3592_vm6, %vm5208_vm5  ;;  %vm267_vm5 = vcmp.ge.s32.totalorder %v3580_v20, 1  ;;  %v5402_v36 = vmov 0 }
  0x63   : > { %v772_v11 = vand.u32 4294901760, %v771_v10  ;;  %vm3597_vm8 = vmand %vm261_vm3, %vm263_vm4  ;;  %vm5212_vm4 = vcmp.ge.s32.totalorder %v3585_v24, 2  ;;  %5375 = vst [vmem:[#allocation17_spill] sm:$0xff] %v3632_v35  ;;  %vm269_vm3 = vcmp.lt.s32.totalorder %v3580_v20, 17  ;;  %v3685_v49 = vsub.f32 %v593_v29, %v3632_v35 }
  0x64   : > { %vm287_vm14 = vmand %vm3597_vm8, %vm5206_vm7 }
  0x65   : > { %340 = vrot.lane.b32.xlu1 %v3499_v4, %s3288_s23  ;;  %349 = vrot.lane.b32.xlu0 %v3495_v3, %s3290_s25  ;;  %s3304_s23 = smov 112   ;;  %vm3625_vm2 = vmand %vm3592_vm6, %vm5207_vm10  ;;  %vm266_vm10 = vcmp.ge.s32.totalorder %v3578_v19, 1 }
  0x66   : > { %773 = vmatprep.mubr.f32.mxu1 %v772_v11  ;;  %vm3638_vm7 = vmand %vm3597_vm8, %vm5209_vm12 }
  0x67   : > { %vm3653_vm12 = vmand %vm3592_vm6, %vm5211_vm1 }
  0x68   : > { %vm3678_vm1 = vmand %vm267_vm5, %vm269_vm3 }
  0x69   : > { %351 = vrot.lane.b32.xlu1 %v3499_v4, %s3290_s25  ;;  %360 = vrot.lane.b32.xlu0 %v3495_v3, %s3291_s30  ;;  %s3306_s25 = smov 110   ;;  %v5383_v48 = vsel %vm3678_vm1, 4294967295, %v5382_v48 }
  0x6a   : > { %5384 = vst [vmem:[#allocation18_spill] sm:$0xff] %v5383_v48 }
  0x6d   : > { %362 = vrot.lane.b32.xlu1 %v3499_v4, %s3291_s30  ;;  %371 = vrot.lane.b32.xlu0 %v3495_v3, %s3292_s8  ;;  %s3307_s30 = smov 98  }
  0x71   : > { %373 = vrot.lane.b32.xlu1 %v3499_v4, %s3292_s8  ;;  %329 = vrot.lane.b32.xlu0 %v3499_v4, %s3289_s21  ;;  %s3305_s21 = smov 111   ;;  %s3308_s8 = smov 97  }
  0x75   : > { %384 = vrot.lane.b32.xlu1 %v3499_v4, %s3293_s9  ;;  %382 = vrot.lane.b32.xlu0 %v3495_v3, %s3293_s9  ;;  %s3309_s9 = smov 96  }
  0x79   : > { %395 = vrot.lane.b32.xlu1 %v3499_v4, %s3294_s13  ;;  %393 = vrot.lane.b32.xlu0 %v3495_v3, %s3294_s13 }
  0x7d   : > { %406 = vrot.lane.b32.xlu1 %v3499_v4, %s3295_s14  ;;  %404 = vrot.lane.b32.xlu0 %v3495_v3, %s3295_s14 }
  0x81   : > { %417 = vrot.lane.b32.xlu1 %v3499_v4, %s3296_s28  ;;  %415 = vrot.lane.b32.xlu0 %v3495_v3, %s3296_s28 }
  0x85   : > { %428 = vrot.lane.b32.xlu1 %v3499_v4, %s3297_s27  ;;  %426 = vrot.lane.b32.xlu0 %v3495_v3, %s3297_s27  ;;  %s3310_s27 = smov 95  }
  0x89   : > { %439 = vrot.lane.b32.xlu1 %v3499_v4, %s3298_s5  ;;  %437 = vrot.lane.b32.xlu0 %v3495_v3, %s3298_s5  ;;  %s3311_s5 = smov 94  }
  0x8d   : > { %450 = vrot.lane.b32.xlu1 %v3499_v4, %s3299_s6  ;;  %448 = vrot.lane.b32.xlu0 %v3495_v3, %s3299_s6 }
  0x91   : > { %463 = vrot.lane.b32.xlu1 %v3499_v4, %s3300_s7  ;;  %461 = vrot.lane.b32.xlu0 %v3495_v3, %s3300_s7 }
  0x95   : > { %474 = vrot.lane.b32.xlu1 %v3499_v4, %s3301_s10  ;;  %472 = vrot.lane.b32.xlu0 %v3495_v3, %s3301_s10 }
  0x99   : > { %485 = vrot.lane.b32.xlu1 %v3499_v4, %s3302_s11  ;;  %483 = vrot.lane.b32.xlu0 %v3495_v3, %s3302_s11 }
  0x9d   : > { %496 = vrot.lane.b32.xlu1 %v3499_v4, %s3303_s12  ;;  %494 = vrot.lane.b32.xlu0 %v3495_v3, %s3303_s12 }
  0xa1   : > { %507 = vrot.lane.b32.xlu1 %v3499_v4, %s3304_s23  ;;  %505 = vrot.lane.b32.xlu0 %v3495_v3, %s3304_s23 }
  0xa5   : > { %518 = vrot.lane.b32.xlu1 %v3499_v4, %s3305_s21  ;;  %516 = vrot.lane.b32.xlu0 %v3495_v3, %s3305_s21 }
  0xa9   : > { %529 = vrot.lane.b32.xlu1 %v3499_v4, %s3306_s25  ;;  %527 = vrot.lane.b32.xlu0 %v3495_v3, %s3306_s25 }
  0xad   : > { %540 = vrot.lane.b32.xlu1 %v3499_v4, %s3307_s30  ;;  %538 = vrot.lane.b32.xlu0 %v3495_v3, %s3307_s30  ;;  %s2548_s30 = scalar_lea.sflag [#allocation7], %s3481_s29 }
  0xb1   : > { %551 = vrot.lane.b32.xlu1 %v3499_v4, %s3308_s8  ;;  %549 = vrot.lane.b32.xlu0 %v3495_v3, %s3308_s8 }
  0xb5   : > { %562 = vrot.lane.b32.xlu1 %v3499_v4, %s3309_s9  ;;  %560 = vrot.lane.b32.xlu0 %v3495_v3, %s3309_s9 }
  0xb9   : > { %573 = vrot.lane.b32.xlu1 %v3499_v4, %s3310_s27  ;;  %571 = vrot.lane.b32.xlu0 %v3495_v3, %s3310_s27 }
  0xbd   : > { %584 = vrot.lane.b32.xlu1 %v3499_v4, %s3311_s5  ;;  %582 = vrot.lane.b32.xlu0 %v3495_v3, %s3311_s5 }
  0xd3   : > { %v339_v17 = vpop.permute.xlu1 %338  ;;  %v328_v18 = vpop.permute.xlu0 %327 }
  0xd7   : > { %v341_v21 = vpop.permute.xlu1 %340  ;;  %v350_v22 = vpop.permute.xlu0 %349 }
  0xd8   : > { %v343_v33 = vsel %vm342_vm9, %v339_v17, %v341_v21  ;;  %v344_v38 = vsel %vm342_vm9, %v341_v21, %v339_v17  ;;  %vm5227_vm9 = vcmp.lt.s32.totalorder %v3574_v13, 17 }
  0xd9   : > { %v346_v39 = vsel %vm287_vm14, %v343_v33, 0.0  ;;  %vm3668_vm14 = vmand %vm3597_vm8, %vm5212_vm4  ;;  %v345_v50 = vsel %vm3607_vm11, %v344_v38, 0.0  ;;  %vm5385_vm4 = vcmp.lt.s32.totalorder %v3574_v13, 31 }
  0xda   : > { %v658_v51 = vand.u32 4294901760, %v346_v39  ;;  %v660_v5 = vand.u32 4294901760, %v345_v50 }
  0xdb   : > { %v352_v25 = vpop.permute.xlu1 %351  ;;  %v361_v26 = vpop.permute.xlu0 %360 }
  0xdc   : > { %v354_v43 = vsel %vm353_vm15, %v350_v22, %v352_v25  ;;  %v355_v44 = vsel %vm353_vm15, %v352_v25, %v350_v22  ;;  %vm386_vm15 = vcmp.lt.s32.totalorder %v3574_v13, 18  ;;  %v3738_v14 = vsub.f32 %v346_v39, %v658_v51 }
  0xdd   : > { %v356_v55 = vsel %vm3592_vm6, %v355_v44, 0.0  ;;  %v357_v56 = vsel %vm3597_vm8, %v354_v43, 0.0  ;;  %v3772_v38 = vsub.f32 %v345_v50, %v660_v5 }
  0xde   : > { %v662_v15 = vand.u32 4294901760, %v357_v56  ;;  %v664_v16 = vand.u32 4294901760, %v356_v55 }
  0xdf   : > { %v363_v31 = vpop.permute.xlu1 %362  ;;  %v372_v32 = vpop.permute.xlu0 %371 }
  0xe0   : > { %v365_v37 = vsel %vm5210_vm13, %v361_v26, %v363_v31  ;;  %vm268_vm13 = vcmp.lt.s32.totalorder %v3578_v19, 17  ;;  %v366_v52 = vsel %vm5385_vm4, %v363_v31, %v361_v26  ;;  %v3786_v43 = vsub.f32 %v357_v56, %v662_v15 }
  0xe1   : > { %v368_v47 = vsel %vm3638_vm7, %v365_v37, 0.0  ;;  %vm3697_vm5 = vmand %vm266_vm10, %vm268_vm13  ;;  %vm5389_vm7 = vcmp.lt.s32.totalorder %v3585_v24, 14  ;;  %vm5392_vm10 = vcmp.lt.s32.totalorder %v3574_v13, 30  ;;  %v367_v6 = vsel %vm3625_vm2, %v366_v52, 0.0 }
  0xe2   : > { %v5387_v54 = vsel %vm3697_vm5, 4294967295, %v5386_v54  ;;  %vm3709_vm11 = vmand %vm3597_vm8, %vm5389_vm7  ;;  %v666_v62 = vand.u32 4294901760, %v368_v47  ;;  %vm5393_vm8 = vcmp.ge.s32.totalorder %v3585_v24, 2  ;;  %vm5397_vm2 = vcmp.lt.s32.totalorder %v3583_v23, 14 }
  0xe3   : > { %v374_v40 = vpop.permute.xlu1 %373  ;;  %v330_v42 = vpop.permute.xlu0 %329  ;;  %5388 = vst [vmem:[#allocation19_spill] sm:$0xff] %v5387_v54  ;;  %vm293_vm13 = vmand %vm3678_vm1, %vm5393_vm8  ;;  %v668_v29 = vand.u32 4294901760, %v367_v6  ;;  %v3788_v44 = vsub.f32 %v356_v55, %v664_v16  ;;  %vm5414_vm8 = vcmp.lt.s32.totalorder %v3585_v24, 15 }
  0xe4   : > { %v332_v46 = vsel %vm331_vm0, %v328_v18, %v330_v42  ;;  %v333_v53 = vsel %vm331_vm0, %v330_v42, %v328_v18  ;;  %vm5214_vm0 = vcmp.lt.s32.totalorder %v3574_v13, 16  ;;  %v376_v63 = vsel %vm5392_vm10, %v372_v32, %v374_v40  ;;  %vm290_vm4 = vmand %vm3592_vm6, %vm5397_vm2 }
  0xe5   : > { %v334_v58 = vsel %vm3653_vm12, %v333_v53, 0.0  ;;  %v335_v59 = vsel %vm3668_vm14, %v332_v46, 0.0  ;;  %vm5394_vm12 = vcmp.ge.s32.totalorder %v3583_v23, 2  ;;  %vm5398_vm14 = vmmov %vm5392_vm10  ;;  %v379_v18 = vsel %vm3709_vm11, %v376_v63, 0.0  ;;  %5410 = vst [vmem:[#allocation25_spill] sm:$0xff] %v3788_v44 }
  0xe6   : > { %v654_v1 = vand.u32 4294901760, %v335_v59  ;;  %v656_v2 = vand.u32 4294901760, %v334_v58  ;;  %vm3730_vm3 = vmand %vm3697_vm5, %vm5394_vm12  ;;  %v377_v17 = vsel %vm5398_vm14, %v374_v40, %v372_v32  ;;  %v3753_v30 = vsub.f32 %v368_v47, %v666_v62 }
  0xe7   : > { %v385_v60 = vpop.permute.xlu1 %384  ;;  %v383_v61 = vpop.permute.xlu0 %382  ;;  %v378_v32 = vsel %vm290_vm4, %v377_v17, 0.0  ;;  %vm5401_vm6 = vcmp.ge.s32.totalorder %v3583_v23, 1  ;;  %v670_v39 = vand.u32 4294901760, %v379_v18  ;;  %vm5405_vm11 = vcmp.ge.s32.totalorder %v3585_v24, 1 }
  0xe8   : > { %v387_v11 = vsel %vm386_vm15, %v383_v61, %v385_v60  ;;  %v388_v12 = vsel %vm386_vm15, %v385_v60, %v383_v61  ;;  %v3748_v21 = vsub.f32 %v335_v59, %v654_v1  ;;  %v3750_v25 = vpack.c.bf16 %v658_v51, %v654_v1  ;;  %vm3766_vm7 = vmand %vm3697_vm5, %vm5401_vm6 }
  0xe9   : > { %v390_v22 = vsel %vm293_vm13, %v387_v11, 0.0  ;;  %vm5213_vm15 = vcmp.lt.s32.totalorder %v3574_v13, 15  ;;  %v3755_v27 = vsub.f32 %v334_v58, %v656_v2  ;;  %v389_v31 = vsel %vm3730_vm3, %v388_v12, 0.0  ;;  %vm3778_vm10 = vmand %vm3678_vm1, %vm5405_vm11 }
  0xea   : > { %5399 = vst [vmem:[#allocation20_spill] sm:$0xff] %v3750_v25  ;;  %v674_v33 = vand.u32 4294901760, %v390_v22  ;;  %2661 = vmatprep.subr.bf16.mxu1 %v3750_v25  ;;  %v3760_v34 = vpack.c.bf16 %v660_v5, %v656_v2  ;;  %v5403_v36 = vsel %vm3766_vm7, 4294967295, %v5402_v36  ;;  %v5406_v40 = vmov 0  ;;  %vm3830_vm13 = vmand %vm3678_vm1, %vm5414_vm8 }
  0xeb   : > { %v396_v26 = vpop.permute.xlu1 %395  ;;  %v394_v28 = vpop.permute.xlu0 %393  ;;  %5404 = vst [vmem:[#allocation22_spill] sm:$0xff] %v5403_v36  ;;  %v5407_v40 = vsel %vm3778_vm10, 4294967295, %v5406_v40  ;;  %v3784_v42 = vpack.c.bf16 %v666_v62, %v662_v15  ;;  %v676_v45 = vand.u32 4294901760, %v389_v31  ;;  %v2756_v46 = vpack.c.bf16 %v3738_v14, %v3748_v21 }
  0xec   : > { %5400 = vst [vmem:[#allocation21_spill] sm:$0xff] %v3760_v34  ;;  %v399_v37 = vsel %vm5227_vm9, %v396_v26, %v394_v28  ;;  %5408 = vst [vmem:[#allocation23_spill] sm:$0xff] %v5407_v40  ;;  %v398_v41 = vsel %vm5227_vm9, %v394_v28, %v396_v26  ;;  %2663 = vmatpush1.bf16.msra.mxu1 %v3760_v34  ;;  %v3793_v51 = vsub.f32 %v367_v6, %v668_v29  ;;  %v5420_v28 = vmov 0 }
  0xed   : > { %5409 = vst [vmem:[#allocation24_spill] sm:$0xff] %v3784_v42  ;;  %v672_v52 = vand.u32 4294901760, %v378_v32  ;;  %v400_v53 = vsel %vm3766_vm7, %v399_v37, 0.0  ;;  %2665 = vmatprep.subr.bf16.mxu1 %v3784_v42  ;;  %v2758_v55 = vpack.c.bf16 %v3772_v38, %v3755_v27  ;;  %v3800_v56 = vsub.f32 %v390_v22, %v674_v33  ;;  %2757 = vmatprep.subr.bf16.mxu0 %v2756_v46 }
  0xee   : > { %5411 = vst [vmem:[#allocation26_spill] sm:$0xff] %v3793_v51  ;;  %v401_v57 = vsel %vm3778_vm10, %v398_v41, 0.0  ;;  %v2760_v58 = vpack.c.bf16 %v3753_v30, %v3786_v43  ;;  %v3806_v59 = vpack.c.bf16 %v668_v29, %v664_v16  ;;  %v3808_v60 = vsub.f32 %v379_v18, %v670_v39 }
  0xef   : > { %v407_v47 = vpop.permute.xlu1 %406  ;;  %v405_v50 = vpop.permute.xlu0 %404  ;;  %2759 = vmatpush1.bf16.msra.mxu0 %v2758_v55  ;;  %v3814_v63 = vpack.c.bf16 %v674_v33, %v670_v39  ;;  %v3816_v1 = vsub.f32 %v389_v31, %v676_v45  ;;  %v680_v2 = vand.u32 4294901760, %v400_v53  ;;  %v678_v12 = vand.u32 4294901760, %v401_v57 }
  0xf0   : > { %5412 = vst [vmem:[#allocation27_spill] sm:$0xff] %v3806_v59  ;;  %v409_v61 = vsel %vm5214_vm0, %v405_v50, %v407_v47  ;;  %v410_v62 = vsel %vm5214_vm0, %v407_v47, %v405_v50  ;;  %2761 = vmatprep.subr.bf16.mxu0 %v2760_v58  ;;  %2667 = vmatpush1.bf16.msra.mxu1 %v3806_v59  ;;  %v5415_v18 = vmov 0  ;;  %vm5419_vm12 = vcmp.lt.s32.totalorder %v3583_v23, 15 }
  0xf1   : > { %5413 = vst [vmem:[#allocation28_spill] sm:$0xff] %v3814_v63  ;;  %v411_v5 = vsel %vm3697_vm5, %v410_v62, 0.0  ;;  %v412_v6 = vsel %vm3678_vm1, %v409_v61, 0.0  ;;  %2669 = vmatprep.subr.bf16.mxu1 %v3814_v63  ;;  %v2762_v17 = vpack.c.bf16 %v3793_v51, %v3788_v44  ;;  %v5416_v18 = vsel %vm3830_vm13, 4294967295, %v5415_v18  ;;  %vm3842_vm3 = vmand %vm3697_vm5, %vm5419_vm12 }
  0xf2   : > { %v682_v15 = vand.u32 4294901760, %v412_v6  ;;  %v684_v16 = vand.u32 4294901760, %v411_v5  ;;  %5417 = vst [vmem:[#allocation29_spill] sm:$0xff] %v5416_v18  ;;  %v2764_v22 = vpack.c.bf16 %v3800_v56, %v3808_v60  ;;  %v3836_v26 = vpack.c.bf16 %v676_v45, %v672_v52 }
  0xf3   : > { %v418_v10 = vpop.permute.xlu1 %417  ;;  %v416_v11 = vpop.permute.xlu0 %415  ;;  %v5421_v28 = vsel %vm3842_vm3, 4294967295, %v5420_v28  ;;  %vm430_vm2 = vcmp.lt.s32.totalorder %v3574_v13, 14  ;;  %vm441_vm4 = vcmp.lt.s32.totalorder %v3574_v13, 2  ;;  %v3848_v29 = vsub.f32 %v378_v32, %v672_v52  ;;  %2763 = vmatpush1.bf16.msra.mxu0 %v2762_v17 }
  0xf4   : > { %5418 = vst [vmem:[#allocation30_spill] sm:$0xff] %v3836_v26  ;;  %5422 = vst [vmem:[#allocation31_spill] sm:$0xff] %v5421_v28  ;;  %v420_v31 = vsel %vm5213_vm15, %v416_v11, %v418_v10  ;;  %v421_v33 = vsel %vm5213_vm15, %v418_v10, %v416_v11  ;;  %v5218_v37 = vand.u32 4294901760, %v3499_v4  ;;  %v3855_v39 = vsub.f32 %v412_v6, %v682_v15 }
  0xf5   : > { %v3857_v41 = vsub.f32 %v411_v5, %v684_v16  ;;  %2765 = vmatprep.subr.bf16.mxu0 %v2764_v22  ;;  %2671 = vmatpush1.bf16.msra.mxu1 %v3836_v26  ;;  %v423_v32 = vsel %vm3830_vm13, %v420_v31, 0.0  ;;  %vm5424_vm14 = vcmp.lt.s32.totalorder %v3583_v23, 14  ;;  %v5220_v47 = vand.u32 4294901760, %v3685_v49 }
  0xf6   : > { %vm298_vm6 = vmand %vm3697_vm5, %vm5424_vm14  ;;  %v3867_v50 = vsub.f32 %v401_v57, %v678_v12  ;;  %v3869_v52 = vsub.f32 %v400_v53, %v680_v2  ;;  %v422_v55 = vsel %vm3842_vm3, %v421_v33, 0.0  ;;  %v2766_v58 = vpack.c.bf16 %v3816_v1, %v3848_v29 }
  0xf7   : > { %5423 = vst [vmem:[#allocation32_spill] sm:$0xff] %v3857_v41  ;;  %v429_v45 = vpop.permute.xlu1 %428  ;;  %v427_v46 = vpop.permute.xlu0 %426  ;;  %vm5426_vm11 = vcmp.lt.s32.totalorder %v3585_v24, 14  ;;  %v3879_v61 = vpack.c.bf16 %v682_v15, %v678_v12  ;;  %v3881_v62 = vpack.c.bf16 %v684_v16, %v680_v2  ;;  %v686_v5 = vand.u32 4294901760, %v423_v32 }
  0xf8   : > { %5425 = vst [vmem:[#allocation33_spill] sm:$0xff] %v3869_v52  ;;  %vm299_vm8 = vmand %vm3678_vm1, %vm5426_vm11  ;;  %v431_v57 = vsel %vm430_vm2, %v427_v46, %v429_v45  ;;  %v432_v53 = vsel %vm430_vm2, %v429_v45, %v427_v46  ;;  %2767 = vmatpush1.bf16.msra.mxu0 %v2766_v58  ;;  %vm5219_vm12 = vcmp.lt.s32.totalorder %v3574_v13, 1  ;;  %vm5230_vm14 = vcmp.lt.s32.totalorder %v3574_v13, 127 }
  0xf9   : > { %5427 = vst [vmem:[#allocation34_spill] sm:$0xff] %v3879_v61  ;;  %5428 = vst [vmem:[#allocation35_spill] sm:$0xff] %v3881_v62  ;;  %v433_v6 = vsel %vm298_vm6, %v432_v53, 0.0  ;;  %2673 = vmatprep.subr.bf16.mxu1 %v3879_v61  ;;  %v434_v10 = vsel %vm299_vm8, %v431_v57, 0.0  ;;  %v2768_v2 = vpack.c.bf16 %v3855_v39, %v3867_v50  ;;  %v2770_v12 = vpack.c.bf16 %v3857_v41, %v3869_v52 }
  0xfa   : > { %v692_v11 = vand.u32 4294901760, %v433_v6  ;;  %vm272_vm2 = vcmp.ge.s32.totalorder %v3578_v19, 4294967295  ;;  %vm274_vm6 = vcmp.lt.s32.totalorder %v3578_v19, 15  ;;  %v688_v17 = vand.u32 4294901760, %v422_v55  ;;  %2675 = vmatpush1.bf16.msra.mxu1 %v3881_v62 }
  0xfb   : > { %v440_v15 = vpop.permute.xlu1 %439  ;;  %v438_v16 = vpop.permute.xlu0 %437  ;;  %v690_v22 = vand.u32 4294901760, %v434_v10  ;;  %v3900_v31 = vsub.f32 %v3499_v4, %v5218_v37  ;;  %vm273_vm11 = vcmp.ge.s32.totalorder %v3580_v20, 4294967295  ;;  %2769 = vmatprep.subr.bf16.mxu0 %v2768_v2  ;;  %vm476_vm8 = vcmp.lt.s32.totalorder %v3574_v13, 126 }
  0xfc   : > { %v3904_v45 = vsub.f32 %v433_v6, %v692_v11  ;;  %v442_v46 = vsel %vm441_vm4, %v438_v16, %v440_v15  ;;  %v443_v58 = vsel %vm441_vm4, %v440_v15, %v438_v16  ;;  %v3914_v57 = vsub.f32 %v3685_v49, %v5220_v47  ;;  %2771 = vmatpush1.bf16.msra.mxu0 %v2770_v12 }
  0xfd   : > { %5429 = vst [vmem:[#allocation36_spill] sm:$0xff] %v3900_v31  ;;  %v3916_v53 = vsub.f32 %v434_v10, %v690_v22  ;;  %vm5432_vm15 = vcmp.ge.s32.totalorder %v3583_v23, 2  ;;  %vm5433_vm0 = vcmp.ge.s32.totalorder %v3585_v24, 2  ;;  %v3922_v0 = vpack.c.bf16 %v692_v11, %v688_v17 }
  0xfe   : > { %5430 = vst [vmem:[#allocation37_spill] sm:$0xff] %v3904_v45  ;;  %v444_v6 = vsel %vm5432_vm15, %v443_v58, 0.0  ;;  %v445_v2 = vsel %vm5433_vm0, %v442_v46, 0.0  ;;  %v3924_v9 = vsub.f32 %v423_v32, %v686_v5  ;;  %v3926_v16 = vpack.c.bf16 %v690_v22, %v686_v5 }
  0xff   : > { %5431 = vst [vmem:[#allocation38_spill] sm:$0xff] %v3916_v53  ;;  %5434 = vst [vmem:[#allocation39_spill] sm:$0xff] %v3922_v0  ;;  %v694_v15 = vand.u32 4294901760, %v445_v2  ;;  %v451_v37 = vpop.permute.xlu1 %450  ;;  %v449_v33 = vpop.permute.xlu0 %448  ;;  %vm275_vm4 = vcmp.lt.s32.totalorder %v3580_v20, 15  ;;  %v3929_v10 = vsub.f32 %v422_v55, %v688_v17  ;;  %v696_v12 = vand.u32 4294901760, %v444_v6 }
 0x100   : > { %5435 = vst [vmem:[#allocation40_spill] sm:$0xff] %v3926_v16  ;;  %v453_v58 = vsel %vm5219_vm12, %v449_v33, %v451_v37  ;;  %v454_v46 = vsel %vm5219_vm12, %v451_v37, %v449_v33  ;;  %2677 = vmatprep.subr.bf16.mxu1 %v3926_v16  ;;  %vm5437_vm0 = vcmp.ge.s32.totalorder %v3583_v23, 1  ;;  %vm487_vm15 = vcmp.lt.s32.totalorder %v3574_v13, 114 }
 0x101   : > { %5436 = vst [vmem:[#allocation41_spill] sm:$0xff] %v3929_v10  ;;  %v455_v32 = vsel %vm5437_vm0, %v454_v46, 0.0  ;;  %v5438_v5 = vand.u32 4294901760, %v3495_v3  ;;  %2679 = vmatpush1.bf16.msra.mxu1 %v3922_v0  ;;  %vm5440_vm12 = vcmp.ge.s32.totalorder %v3585_v24, 1  ;;  %v2772_v33 = vpack.c.bf16 %v3916_v53, %v3924_v9 }
 0x102   : > { %v456_v37 = vsel %vm5440_vm12, %v453_v58, 0.0  ;;  %v700_v22 = vand.u32 4294901760, %v455_v32  ;;  %v2774_v46 = vpack.c.bf16 %v3904_v45, %v3929_v10  ;;  %v3955_v18 = vsub.f32 %v445_v2, %v694_v15 }
 0x103   : > { %v3942_v11 = vsub.f32 %v3495_v3, %v5438_v5  ;;  %v698_v55 = vand.u32 4294901760, %v456_v37  ;;  %v464_v17 = vpop.permute.xlu1 %463  ;;  %v462_v28 = vpop.permute.xlu0 %461  ;;  %v3957_v48 = vsub.f32 %v444_v6, %v696_v12  ;;  %2773 = vmatprep.subr.bf16.mxu0 %v2772_v33  ;;  %vm5441_vm12 = vcmp.lt.s32.totalorder %v3583_v23, 15 }
 0x104   : > { %v3959_v54 = vsub.f32 %v455_v32, %v700_v22  ;;  %v466_v58 = vsel %vm5230_vm14, %v462_v28, %v464_v17  ;;  %v467_v40 = vsel %vm5230_vm14, %v464_v17, %v462_v28  ;;  %2775 = vmatpush1.bf16.msra.mxu0 %v2774_v46  ;;  %vm5442_vm0 = vcmp.lt.s32.totalorder %v3585_v24, 15  ;;  %vm3981_vm14 = vmand %vm272_vm2, %vm274_vm6 }
 0x105   : > { %5439 = vst [vmem:[#allocation42_spill] sm:$0xff] %v3942_v11  ;;  %v3965_v36 = vsub.f32 %v456_v37, %v698_v55  ;;  %v468_v2 = vsel %vm5441_vm12, %v466_v58, 0.0  ;;  %v469_v47 = vsel %vm5442_vm0, %v467_v40, 0.0  ;;  %v3971_v6 = vpack.c.bf16 %v700_v22, %v696_v12  ;;  %vm3996_vm2 = vmand %vm273_vm11, %vm275_vm4 }
 0x106   : > { %vm5265_vm9 = vcmp.lt.s32.totalorder %v3574_v13, 113  ;;  %v706_v33 = vand.u32 4294901760, %v469_v47  ;;  %v708_v5 = vand.u32 4294901760, %v468_v2  ;;  %v3975_v35 = vpack.c.bf16 %v698_v55, %v694_v15 }
 0x107   : > { %5443 = vst [vmem:[#allocation43_spill] sm:$0xff] %v3971_v6  ;;  %v5445_v28 = vmov 0  ;;  %v5448_v40 = vand.u32 4294901760, %v3755_v27  ;;  %v475_v17 = vpop.permute.xlu1 %474  ;;  %v473_v37 = vpop.permute.xlu0 %472  ;;  %v2776_v22 = vpack.c.bf16 %v3965_v36, %v3955_v18  ;;  %v2778_v15 = vpack.c.bf16 %v3959_v54, %v3957_v48 }
 0x108   : > { %5444 = vst [vmem:[#allocation44_spill] sm:$0xff] %v3975_v35  ;;  %v5446_v28 = vsel %vm3981_vm14, 4294967295, %v5445_v28  ;;  %v5449_v55 = vmov 0  ;;  %v5452_v46 = vand.u32 4294901760, %v3900_v31  ;;  %v4008_v0 = vsub.f32 %v469_v47, %v706_v33  ;;  %2681 = vmatprep.subr.bf16.mxu1 %v3975_v35 }
 0x109   : > { %5447 = vst [vmem:[#allocation45_spill] sm:$0xff] %v5446_v28  ;;  %v794_v12 = vsub.f32 %v3755_v27, %v5448_v40  ;;  %v5450_v55 = vsel %vm3996_vm2, 4294967295, %v5449_v55  ;;  %v5453_v40 = vand.u32 4294901760, %v3772_v38  ;;  %v4010_v16 = vsub.f32 %v468_v2, %v708_v5  ;;  %2683 = vmatpush1.bf16.msra.mxu1 %v3971_v6  ;;  %2777 = vmatprep.subr.bf16.mxu0 %v2776_v22 }
 0x10a   : > { %5451 = vst [vmem:[#allocation46_spill] sm:$0xff] %v5450_v55  ;;  %v4003_v58 = vsub.f32 %v3900_v31, %v5452_v46  ;;  %v477_v62 = vsel %vm476_vm8, %v473_v37, %v475_v17  ;;  %v478_v46 = vsel %vm476_vm8, %v475_v17, %v473_v37  ;;  %v5455_v26 = vand.u32 4294901760, %v3499_v4  ;;  %2779 = vmatpush1.bf16.msra.mxu0 %v2778_v15 }
 0x10b   : > { %v806_v32 = vsub.f32 %v3772_v38, %v5453_v40  ;;  %5454 = vst [vmem:[#allocation47_spill] sm:$0xff] %v4010_v16  ;;  %vm5457_vm6 = vcmp.ge.s32.totalorder %v3583_v23, 2  ;;  %v5460_v2 = vand.u32 4294901760, %v3495_v3  ;;  %vm5264_vm4 = vcmp.lt.s32.totalorder %v3574_v13, 112  ;;  %v484_v22 = vpop.permute.xlu0 %483 }
 0x10c   : > { %v4021_v40 = vpack.c.bf16 %v706_v33, %v5455_v26  ;;  %vm4027_vm11 = vmand %vm3981_vm14, %vm5457_vm6  ;;  %vm5462_vm8 = vcmp.lt.s32.totalorder %v3583_v23, 14  ;;  %vm5463_vm12 = vcmp.lt.s32.totalorder %v3585_v24, 14  ;;  %vm5464_vm0 = vcmp.ge.s32.totalorder %v3585_v24, 2 }
 0x10d   : > { %v4033_v61 = vpack.c.bf16 %v708_v5, %v5460_v2  ;;  %v479_v4 = vsel %vm5462_vm8, %v477_v62, 0.0  ;;  %v480_v26 = vsel %vm5463_vm12, %v478_v46, 0.0  ;;  %vm301_vm6 = vmand %vm3996_vm2, %vm5464_vm0  ;;  %v5465_v3 = vand.u32 4294901760, %v3738_v14  ;;  %v486_v62 = vpop.permute.xlu1 %485 }
 0x10e   : > { %5456 = vst [vmem:[#allocation48_spill] sm:$0xff] %v4021_v40  ;;  %v795_v37 = vand.u32 4294901760, %v794_v12  ;;  %2685 = vmatprep.subr.bf16.mxu1 %v4021_v40  ;;  %v2780_v15 = vpack.c.bf16 %v4008_v0, %v3900_v31  ;;  %v2782_v46 = vpack.c.bf16 %v4010_v16, %v3942_v11  ;;  %v807_v2 = vand.u32 4294901760, %v806_v32 }
 0x10f   : > { %5461 = vst [vmem:[#allocation49_spill] sm:$0xff] %v4033_v61  ;;  %v4048_v5 = vsub.f32 %v3738_v14, %v5465_v3  ;;  %v710_v17 = vand.u32 4294901760, %v480_v26  ;;  %v488_v6 = vsel %vm487_vm15, %v484_v22, %v486_v62  ;;  %v489_v3 = vsel %vm487_vm15, %v486_v62, %v484_v22  ;;  %2687 = vmatpush1.bf16.msra.mxu1 %v4033_v61 }
 0x110   : > { %v712_v33 = vand.u32 4294901760, %v479_v4  ;;  %v490_v12 = vsel %vm4027_vm11, %v488_v6, 0.0  ;;  %v491_v40 = vsel %vm301_vm6, %v489_v3, 0.0  ;;  %2781 = vmatprep.subr.bf16.mxu0 %v2780_v15  ;;  %v5466_v31 = vand.u32 4294901760, %v3748_v21 }
 0x111   : > { %v5467_v35 = vand.u32 4294901760, %v3788_v44  ;;  %v714_v22 = vand.u32 4294901760, %v491_v40  ;;  %v716_v16 = vand.u32 4294901760, %v490_v12  ;;  %2783 = vmatpush1.bf16.msra.mxu0 %v2782_v46  ;;  %v5468_v47 = vand.u32 4294901760, %v3793_v51  ;;  %v497_v3 = vpop.permute.xlu1 %496 }
 0x112   : > { %v788_v32 = vsub.f32 %v3748_v21, %v5466_v31  ;;  %vm5469_vm15 = vcmp.ge.s32.totalorder %v3585_v24, 1  ;;  %v5470_v31 = vmov 0  ;;  %v801_v62 = vand.u32 4294901760, %v4048_v5 }
 0x113   : > { %v818_v11 = vsub.f32 %v3788_v44, %v5467_v35  ;;  %v830_v15 = vsub.f32 %v3793_v51, %v5468_v47  ;;  %vm4079_vm11 = vmand %vm3996_vm2, %vm5469_vm15  ;;  %v495_v35 = vpop.permute.xlu0 %494  ;;  %v4084_v61 = vpack.c.bf16 %v807_v2, %v795_v37  ;;  %v4086_v46 = vsub.f32 %v480_v26, %v710_v17 }
 0x114   : > { %v5471_v31 = vsel %vm4079_vm11, 4294967295, %v5470_v31  ;;  %v4088_v6 = vsub.f32 %v491_v40, %v714_v22  ;;  %v4090_v63 = vsub.f32 %v490_v12, %v716_v16  ;;  %v500_v47 = vsel %vm5265_vm9, %v497_v3, %v495_v35 }
 0x115   : > { %5472 = vst [vmem:[#allocation50_spill] sm:$0xff] %v5471_v31  ;;  %5473 = vst [vmem:[#allocation51_spill] sm:$0xff] %v4086_v46  ;;  %v4096_v51 = vsub.f32 %v479_v4, %v712_v33  ;;  %vm5477_vm6 = vcmp.ge.s32.totalorder %v3583_v23, 1  ;;  %v5478_v26 = vmov 0  ;;  %v499_v40 = vsel %vm5265_vm9, %v495_v35, %v497_v3 }
 0x116   : > { %5474 = vst [vmem:[#allocation52_spill] sm:$0xff] %v4088_v6  ;;  %5475 = vst [vmem:[#allocation53_spill] sm:$0xff] %v4090_v63  ;;  %v4108_v5 = vpack.c.bf16 %v714_v22, %v710_v17  ;;  %v789_v4 = vand.u32 4294901760, %v788_v32  ;;  %v819_v37 = vand.u32 4294901760, %v818_v11  ;;  %v5482_v12 = vand.u32 4294901760, %v3848_v29  ;;  %v508_v22 = vpop.permute.xlu1 %507 }
 0x117   : > { %5476 = vst [vmem:[#allocation54_spill] sm:$0xff] %v4096_v51  ;;  %vm4102_vm15 = vmand %vm3981_vm14, %vm5477_vm6  ;;  %v502_v3 = vsel %vm4079_vm11, %v500_v47, 0.0  ;;  %v831_v17 = vand.u32 4294901760, %v830_v15  ;;  %v506_v35 = vpop.permute.xlu0 %505  ;;  %v4122_v59 = vpack.c.bf16 %v716_v16, %v712_v33  ;;  %v2784_v11 = vpack.c.bf16 %v4088_v6, %v4086_v46 }
 0x118   : > { %v5479_v26 = vsel %vm4102_vm15, 4294967295, %v5478_v26  ;;  %5481 = vst [vmem:[#allocation56_spill] sm:$0xff] %v4108_v5  ;;  %v4117_v44 = vsub.f32 %v3848_v29, %v5482_v12  ;;  %2689 = vmatprep.subr.bf16.mxu1 %v4108_v5  ;;  %v2786_v32 = vpack.c.bf16 %v4090_v63, %v4096_v51  ;;  %v501_v47 = vsel %vm4102_vm15, %v499_v40, 0.0 }
 0x119   : > { %5480 = vst [vmem:[#allocation55_spill] sm:$0xff] %v5479_v26  ;;  %5483 = vst [vmem:[#allocation57_spill] sm:$0xff] %v4122_v59  ;;  %v510_v15 = vsel %vm5264_vm4, %v506_v35, %v508_v22  ;;  %v718_v31 = vand.u32 4294901760, %v502_v3  ;;  %v511_v16 = vsel %vm5264_vm4, %v508_v22, %v506_v35  ;;  %2691 = vmatpush1.bf16.msra.mxu1 %v4122_v59  ;;  %2785 = vmatprep.subr.bf16.mxu0 %v2784_v11  ;;  %v5485_v22 = vmov 0 }
 0x11a   : > { %v512_v33 = vsel %vm3981_vm14, %v510_v15, 0.0  ;;  %v4140_v2 = vpack.c.bf16 %v801_v62, %v789_v4  ;;  %v513_v5 = vsel %vm3996_vm2, %v511_v16, 0.0  ;;  %2787 = vmatpush1.bf16.msra.mxu0 %v2786_v32  ;;  %vm5484_vm4 = vcmp.lt.s32.totalorder %v3585_v24, 15  ;;  %v519_v11 = vpop.permute.xlu1 %518 }
 0x11b   : > { %vm4151_vm9 = vmand %vm3996_vm2, %vm5484_vm4  ;;  %v720_v62 = vand.u32 4294901760, %v501_v47  ;;  %v722_v4 = vand.u32 4294901760, %v513_v5  ;;  %v724_v35 = vand.u32 4294901760, %v512_v33  ;;  %vm5488_vm6 = vcmp.lt.s32.totalorder %v3583_v23, 15  ;;  %v517_v32 = vpop.permute.xlu0 %516 }
 0x11c   : > { %v5486_v22 = vsel %vm4151_vm9, 4294967295, %v5485_v22  ;;  %vm4159_vm12 = vmand %vm3981_vm14, %vm5488_vm6  ;;  %v5489_v15 = vmov 0  ;;  %v4163_v16 = vpack.c.bf16 %v831_v17, %v819_v37  ;;  %v5492_v12 = vand.u32 4294901760, %v3816_v1 }
 0x11d   : > { %5487 = vst [vmem:[#allocation58_spill] sm:$0xff] %v5486_v22  ;;  %v5490_v15 = vsel %vm4159_vm12, 4294967295, %v5489_v15  ;;  %vm5493_vm4 = vcmp.lt.s32.totalorder %v3574_v13, 111  ;;  %v4175_v63 = vsub.f32 %v502_v3, %v718_v31  ;;  %v4177_v46 = vsub.f32 %v513_v5, %v722_v4  ;;  %vm5498_vm6 = vmmov %vm5462_vm8 }
 0x11e   : > { %5491 = vst [vmem:[#allocation59_spill] sm:$0xff] %v5490_v15  ;;  %v4168_v40 = vsub.f32 %v3816_v1, %v5492_v12  ;;  %v521_v59 = vsel %vm5493_vm4, %v517_v32, %v519_v11  ;;  %vm5494_vm0 = vmmov %vm5493_vm4  ;;  %v4179_v6 = vsub.f32 %v512_v33, %v724_v35  ;;  %v5501_v3 = vand.u32 4294901760, %v3869_v52 }
 0x11f   : > { %v522_v51 = vsel %vm5494_vm0, %v519_v11, %v517_v32  ;;  %5495 = vst [vmem:[#allocation60_spill] sm:$0xff] %v4175_v63  ;;  %5496 = vst [vmem:[#allocation61_spill] sm:$0xff] %v4177_v46  ;;  %v4200_v33 = vpack.c.bf16 %v722_v4, %v718_v31  ;;  %vm5503_vm0 = vcmp.lt.s32.totalorder %v3585_v24, 14  ;;  %v4210_v32 = vsub.f32 %v501_v47, %v720_v62  ;;  %v528_v22 = vpop.permute.xlu0 %527 }
 0x120   : > { %5497 = vst [vmem:[#allocation62_spill] sm:$0xff] %v4179_v6  ;;  %v524_v37 = vsel %vm4151_vm9, %v522_v51, 0.0  ;;  %vm4187_vm8 = vmand %vm3981_vm14, %vm5498_vm6  ;;  %v4195_v5 = vsub.f32 %v3869_v52, %v5501_v3  ;;  %v523_v51 = vsel %vm4159_vm12, %v521_v59, 0.0  ;;  %v530_v3 = vpop.permute.xlu1 %529  ;;  %v4212_v28 = vpack.c.bf16 %v724_v35, %v720_v62 }
 0x121   : > { %5502 = vst [vmem:[#allocation63_spill] sm:$0xff] %v4200_v33  ;;  %vm4206_vm6 = vmand %vm3996_vm2, %vm5503_vm0  ;;  %v726_v26 = vand.u32 4294901760, %v524_v37  ;;  %v2788_v59 = vpack.c.bf16 %v4177_v46, %v4175_v63  ;;  %vm5508_vm4 = vcmp.lt.s32.totalorder %v3578_v19, 14  ;;  %vm5509_vm9 = vcmp.ge.s32.totalorder %v3578_v19, 4294967294  ;;  %2693 = vmatprep.subr.bf16.mxu1 %v4200_v33 }
 0x122   : > { %5506 = vst [vmem:[#allocation64_spill] sm:$0xff] %v4210_v32  ;;  %5507 = vst [vmem:[#allocation65_spill] sm:$0xff] %v4212_v28  ;;  %vm5512_vm0 = vcmp.lt.s32.totalorder %v3574_v13, 110  ;;  %vm5514_vm14 = vcmp.lt.s32.totalorder %v3580_v20, 14  ;;  %vm5515_vm11 = vcmp.ge.s32.totalorder %v3580_v20, 4294967294  ;;  %v5518_v35 = vand.u32 4294901760, %v3753_v30  ;;  %2695 = vmatpush1.bf16.msra.mxu1 %v4212_v28 }
 0x123   : > { %vm4220_vm12 = vmand %vm5509_vm9, %vm5508_vm4  ;;  %v532_v47 = vsel %vm5512_vm0, %v528_v22, %v530_v3  ;;  %v728_v12 = vand.u32 4294901760, %v523_v51  ;;  %2789 = vmatprep.subr.bf16.mxu0 %v2788_v59  ;;  %v2790_v20 = vpack.c.bf16 %v4179_v6, %v4210_v32  ;;  %vm564_vm9 = vcmp.lt.s32.totalorder %v3574_v13, 96  ;;  %v539_v6 = vpop.permute.xlu0 %538 }
 0x124   : > { %vm5513_vm2 = vmmov %vm5512_vm0  ;;  %v824_v4 = vsub.f32 %v3753_v30, %v5518_v35  ;;  %v534_v15 = vsel %vm4187_vm8, %v532_v47, 0.0  ;;  %v5523_v11 = vand.u32 4294901760, %v3786_v43  ;;  %v4268_v28 = vsub.f32 %v524_v37, %v726_v26  ;;  %v541_v32 = vpop.permute.xlu1 %540 }
 0x125   : > { %v533_v62 = vsel %vm5513_vm2, %v530_v3, %v528_v22  ;;  %vm4234_vm15 = vmand %vm5515_vm11, %vm5514_vm14  ;;  %v5519_v22 = vand.u32 4294901760, %v3857_v41  ;;  %v732_v33 = vand.u32 4294901760, %v534_v15  ;;  %vm5520_vm14 = vcmp.ge.s32.totalorder %v3583_v23, 2  ;;  %2791 = vmatpush1.bf16.msra.mxu0 %v2790_v20 }
 0x126   : > { %v535_v55 = vsel %vm4206_vm6, %v533_v62, 0.0  ;;  %vm4258_vm2 = vmand %vm4220_vm12, %vm5520_vm14  ;;  %v812_v59 = vsub.f32 %v3786_v43, %v5523_v11  ;;  %5524 = vst [vmem:[#allocation66_spill] sm:$0xff] %v4268_v28  ;;  %vm5525_vm8 = vcmp.ge.s32.totalorder %v3585_v24, 2  ;;  %vm5528_vm4 = vcmp.lt.s32.totalorder %v3574_v13, 98 }
 0x127   : > { %v4252_v3 = vsub.f32 %v3857_v41, %v5519_v22  ;;  %v730_v35 = vand.u32 4294901760, %v535_v55  ;;  %v5298_v22 = vand.u32 4294901760, %v3929_v10  ;;  %vm309_vm11 = vmand %vm4234_vm15, %vm5525_vm8  ;;  %v4276_v46 = vsub.f32 %v534_v15, %v732_v33  ;;  %v550_v17 = vpop.permute.xlu0 %549 }
 0x128   : > { %v543_v11 = vsel %vm5528_vm4, %v539_v6, %v541_v32  ;;  %v825_v62 = vand.u32 4294901760, %v824_v4  ;;  %v4280_v47 = vsub.f32 %v523_v51, %v728_v12  ;;  %vm5530_vm6 = vmmov %vm5528_vm4  ;;  %vm5532_vm0 = vcmp.ge.s32.totalorder %v3583_v23, 1 }
 0x129   : > { %v4274_v63 = vsub.f32 %v535_v55, %v730_v35  ;;  %5527 = vst [vmem:[#allocation68_spill] sm:$0xff] %v4276_v46  ;;  %v544_v37 = vsel %vm5530_vm6, %v541_v32, %v539_v6  ;;  %v4284_v20 = vpack.c.bf16 %v730_v35, %v726_v26  ;;  %vm4290_vm14 = vmand %vm4220_vm12, %vm5532_vm0  ;;  %v4294_v15 = vpack.c.bf16 %v732_v33, %v728_v12  ;;  %v552_v35 = vpop.permute.xlu1 %551 }
 0x12a   : > { %5529 = vst [vmem:[#allocation69_spill] sm:$0xff] %v4280_v47  ;;  %vm575_vm8 = vcmp.lt.s32.totalorder %v3574_v13, 95  ;;  %v545_v4 = vsel %vm4258_vm2, %v543_v11, 0.0  ;;  %v546_v6 = vsel %vm309_vm11, %v544_v37, 0.0  ;;  %vm5536_vm4 = vcmp.ge.s32.totalorder %v3585_v24, 1 }
 0x12b   : > { %5526 = vst [vmem:[#allocation67_spill] sm:$0xff] %v4274_v63  ;;  %5531 = vst [vmem:[#allocation70_spill] sm:$0xff] %v4284_v20  ;;  %v813_v32 = vand.u32 4294901760, %v812_v59  ;;  %v4311_v12 = vsub.f32 %v3929_v10, %v5298_v22  ;;  %2697 = vmatprep.subr.bf16.mxu1 %v4284_v20  ;;  %v2792_v11 = vpack.c.bf16 %v4274_v63, %v4268_v28  ;;  %vm5539_vm2 = vcmp.lt.s32.totalorder %v3574_v13, 97 }
 0x12c   : > { %5535 = vst [vmem:[#allocation71_spill] sm:$0xff] %v4294_v15  ;;  %vm4304_vm6 = vmand %vm4234_vm15, %vm5536_vm4  ;;  %v2794_v37 = vpack.c.bf16 %v4276_v46, %v4280_v47  ;;  %v554_v59 = vsel %vm5539_vm2, %v550_v17, %v552_v35  ;;  %2699 = vmatpush1.bf16.msra.mxu1 %v4294_v15  ;;  %v5541_v33 = vand.u32 4294901760, %v3800_v56  ;;  %v734_v10 = vand.u32 4294901760, %v546_v6 }
 0x12d   : > { %vm5540_vm11 = vmmov %vm5539_vm2  ;;  %v4324_v22 = vpack.c.bf16 %v825_v62, %v813_v32  ;;  %v736_v41 = vand.u32 4294901760, %v545_v4  ;;  %v556_v28 = vsel %vm4290_vm14, %v554_v59, 0.0  ;;  %2793 = vmatprep.subr.bf16.mxu0 %v2792_v11  ;;  %vm586_vm0 = vcmp.lt.s32.totalorder %v3574_v13, 94  ;;  %v563_v26 = vpop.permute.xlu1 %562  ;;  %v561_v11 = vpop.permute.xlu0 %560 }
 0x12e   : > { %v555_v51 = vsel %vm5540_vm11, %v552_v35, %v550_v17  ;;  %v848_v20 = vsub.f32 %v3800_v56, %v5541_v33  ;;  %v740_v62 = vand.u32 4294901760, %v556_v28  ;;  %2795 = vmatpush1.bf16.msra.mxu0 %v2794_v37  ;;  %v5542_v32 = vand.u32 4294901760, %v3808_v60 }
 0x12f   : > { %v557_v47 = vsel %vm4304_vm6, %v555_v51, 0.0  ;;  %v5543_v59 = vand.u32 4294901760, %v3904_v45  ;;  %v5544_v35 = vand.u32 4294901760, %v4117_v44  ;;  %v5545_v46 = vand.u32 4294901760, %v4168_v40 }
 0x130   : > { %v738_v17 = vand.u32 4294901760, %v557_v47  ;;  %v836_v33 = vsub.f32 %v3808_v60, %v5542_v32  ;;  %v4353_v32 = vsub.f32 %v556_v28, %v740_v62  ;;  %v565_v55 = vsel %vm564_vm9, %v561_v11, %v563_v26 }
 0x131   : > { %v4343_v51 = vsub.f32 %v3904_v45, %v5543_v59  ;;  %v4349_v37 = vpack.c.bf16 %v5545_v46, %v5544_v35  ;;  %v566_v15 = vsel %vm564_vm9, %v563_v26, %v561_v11  ;;  %v4359_v59 = vsub.f32 %v546_v6, %v734_v10  ;;  %v574_v6 = vpop.permute.xlu1 %573  ;;  %v572_v35 = vpop.permute.xlu0 %571 }
 0x132   : > { %v4351_v63 = vsub.f32 %v557_v47, %v738_v17  ;;  %5547 = vst [vmem:[#allocation73_spill] sm:$0xff] %v4353_v32  ;;  %v4361_v45 = vsub.f32 %v545_v4, %v736_v41  ;;  %v4363_v52 = vpack.c.bf16 %v738_v17, %v734_v10  ;;  %v849_v44 = vand.u32 4294901760, %v848_v20 }
 0x133   : > { %5548 = vst [vmem:[#allocation74_spill] sm:$0xff] %v4359_v59  ;;  %v5551_v40 = vand.u32 4294901760, %v3959_v54  ;;  %v568_v47 = vsel %vm4234_vm15, %v566_v15, 0.0  ;;  %vm5552_vm14 = vcmp.lt.s32.totalorder %v3583_v23, 15  ;;  %v837_v10 = vand.u32 4294901760, %v836_v33 }
 0x134   : > { %5546 = vst [vmem:[#allocation72_spill] sm:$0xff] %v4351_v63  ;;  %5549 = vst [vmem:[#allocation75_spill] sm:$0xff] %v4361_v45  ;;  %v567_v20 = vsel %vm4220_vm12, %v565_v55, 0.0  ;;  %2701 = vmatprep.subr.bf16.mxu1 %v4363_v52  ;;  %vm5555_vm4 = vcmp.lt.s32.totalorder %v3585_v24, 15  ;;  %v4392_v17 = vpack.c.bf16 %v740_v62, %v736_v41  ;;  %v2796_v33 = vpack.c.bf16 %v4351_v63, %v4359_v59 }
 0x135   : > { %5550 = vst [vmem:[#allocation76_spill] sm:$0xff] %v4363_v52  ;;  %v4369_v28 = vsub.f32 %v3959_v54, %v5551_v40  ;;  %vm4377_vm9 = vmand %vm4220_vm12, %vm5552_vm14  ;;  %v2798_v55 = vpack.c.bf16 %v4353_v32, %v4361_v45  ;;  %v903_v11 = vand.u32 4294901760, %v4343_v51  ;;  %v576_v46 = vsel %vm575_vm8, %v572_v35, %v574_v6 }
 0x136   : > { %vm4388_vm6 = vmand %vm4234_vm15, %vm5555_vm4  ;;  %v742_v52 = vand.u32 4294901760, %v568_v47  ;;  %v577_v41 = vsel %vm575_vm8, %v574_v6, %v572_v35  ;;  %v578_v62 = vsel %vm4377_vm9, %v576_v46, 0.0  ;;  %2703 = vmatpush1.bf16.msra.mxu1 %v4392_v17  ;;  %2797 = vmatprep.subr.bf16.mxu0 %v2796_v33  ;;  %v4408_v45 = vpack.c.bf16 %v849_v44, %v837_v10  ;;  %v585_v10 = vpop.permute.xlu1 %584  ;;  %v583_v6 = vpop.permute.xlu0 %582 }
 0x137   : > { %v5558_v26 = vand.u32 4294901760, %v3957_v48  ;;  %v744_v32 = vand.u32 4294901760, %v567_v20  ;;  %v579_v59 = vsel %vm4388_vm6, %v577_v41, 0.0  ;;  %2799 = vmatpush1.bf16.msra.mxu0 %v2798_v55  ;;  %vm5559_vm8 = vcmp.lt.s32.totalorder %v3585_v24, 14 }
 0x138   : > { %vm315_vm2 = vmand %vm4234_vm15, %vm5559_vm8  ;;  %v927_v46 = vand.u32 4294901760, %v4369_v28  ;;  %v746_v44 = vand.u32 4294901760, %v579_v59  ;;  %v748_v4 = vand.u32 4294901760, %v578_v62  ;;  %vm5560_vm11 = vcmp.lt.s32.totalorder %v3583_v23, 14 }
 0x139   : > { %v914_v51 = vsub.f32 %v3957_v48, %v5558_v26  ;;  %vm314_vm14 = vmand %vm4220_vm12, %vm5560_vm11  ;;  %v5561_v15 = vand.u32 4294901760, %v4195_v5  ;;  %v5562_v35 = vand.u32 4294901760, %v4252_v3  ;;  %v587_v19 = vsel %vm586_vm0, %v583_v6, %v585_v10 }
 0x13a   : > { %v588_v28 = vsel %vm586_vm0, %v585_v10, %v583_v6  ;;  %v5563_v55 = vand.u32 4294901760, %v3867_v50  ;;  %v5564_v31 = vand.u32 4294901760, %v3855_v39  ;;  %v4441_v40 = vsub.f32 %v568_v47, %v742_v52 }
 0x13b   : > { %v4429_v33 = vpack.c.bf16 %v5562_v35, %v5561_v15  ;;  %v4443_v5 = vsub.f32 %v579_v59, %v746_v44  ;;  %v4445_v3 = vsub.f32 %v578_v62, %v748_v4  ;;  %v590_v15 = vsel %vm315_vm2, %v588_v28, 0.0 }
 0x13c   : > { %v860_v26 = vsub.f32 %v3867_v50, %v5563_v55  ;;  %v872_v41 = vsub.f32 %v3855_v39, %v5564_v31  ;;  %v4447_v35 = vsub.f32 %v567_v20, %v744_v32  ;;  %v589_v24 = vsel %vm314_vm14, %v587_v19, 0.0 }
 0x13d   : > { %v4449_v23 = vand.u32 4294901760, %v590_v15  ;;  %v4451_v10 = vpack.c.bf16 %v746_v44, %v742_v52  ;;  %v4454_v55 = vpack.c.bf16 %v748_v4, %v744_v32  ;;  %v2800_v47 = vpack.c.bf16 %v4443_v5, %v4441_v40 }
 0x13e   : > { %v5565_v59 = vand.u32 4294901760, %v3924_v9  ;;  %v2802_v52 = vpack.c.bf16 %v4445_v3, %v4447_v35  ;;  %v861_v20 = vand.u32 4294901760, %v860_v26  ;;  %v873_v44 = vand.u32 4294901760, %v872_v41 }
 0x13f   : > { %v4462_v28 = vsub.f32 %v590_v15, %v4449_v23  ;;  %2705 = vmatprep.subr.bf16.mxu1 %v4451_v10  ;;  %v915_v19 = vand.u32 4294901760, %v914_v51  ;;  %v4467_v32 = vand.u32 4294901760, %v589_v24  ;;  %2801 = vmatprep.subr.bf16.mxu0 %v2800_v47  ;;  %v5566_v4 = vand.u32 4294901760, %v3916_v53 }
 0x140   : > { %v884_v62 = vsub.f32 %v3924_v9, %v5565_v59  ;;  %2707 = vmatpush1.bf16.msra.mxu1 %v4454_v55  ;;  %v5567_v15 = vand.u32 4294901760, %v4311_v12  ;;  %2803 = vmatpush1.bf16.msra.mxu0 %v2802_v52  ;;  %v2720_v6 = vpack.c.bf16 %v873_v44, %v861_v20  ;;  %v5568_v26 = vand.u32 4294901760, %v3955_v18 }
 0x141   : > { %v896_v31 = vsub.f32 %v3916_v53, %v5566_v4  ;;  %751 = vmatprep.subr.mxu1 %v4449_v23  ;;  %v5569_v41 = vand.u32 4294901760, %v3965_v36  ;;  %v933_v47 = vand.u32 4294901760, %v4003_v58  ;;  %1254 = vmatprep.subr.mxu0 %v4462_v28  ;;  %v4484_v12 = vpack.c.bf16 %v927_v46, %v915_v19 }
 0x142   : > { %v2726_v59 = vpack.c.bf16 %v903_v11, %v5567_v15  ;;  %v908_v51 = vsub.f32 %v3955_v18, %v5568_v26  ;;  %v885_v4 = vand.u32 4294901760, %v884_v62  ;;  %v5570_v11 = vand.u32 4294901760, %v4008_v0 }
 0x143   : > { %v920_v13 = vsub.f32 %v3965_v36, %v5569_v41  ;;  %v897_v53 = vand.u32 4294901760, %v896_v31  ;;  %v4490_v15 = vsub.f32 %v589_v24, %v4467_v32  ;;  %v5571_v58 = vand.u32 4294901760, %v3914_v57 }
 0x144   : > { %v944_v52 = vsub.f32 %v4008_v0, %v5570_v11  ;;  %v909_v20 = vand.u32 4294901760, %v908_v51  ;;  %753 = vmatpush1.msra.mxu1 %v4467_v32  ;;  %v5573_v24 = vand.u32 4294901760, %v3748_v21  ;;  %v5578_v19 = vand.u32 4294901760, %v3786_v43  ;;  %v5582_v51 = vld [vmem:[#allocation26_spill] sm:$0xff] }
 0x145   : > { %v921_v44 = vand.u32 4294901760, %v920_v13  ;;  %v2724_v26 = vpack.c.bf16 %v897_v53, %v885_v4  ;;  %2709 = vmatprep.subr.bf16.mxu1 %v4140_v2  ;;  %779 = vmatmul.mubr.f32.vlgmr.msra.gmra.mrb[0].mxu1 %v5571_v58  ;;  %v5572_v13 = vand.u32 4294901760, %v3567_v8  ;;  %v5575_v53 = vand.u32 4294901760, %v3755_v27  ;;  %v5577_v8 = vld [vmem:[#allocation27_spill] sm:$0xff]  ;;  %v5584_v4 = vld [vmem:[#allocation28_spill] sm:$0xff] }
 0x146   : > { %v945_v41 = vand.u32 4294901760, %v944_v52  ;;  %2711 = vmatpush1.bf16.msra.mxu1 %v4084_v61  ;;  %1257 = vmatpush1.msra.mxu0 %v4490_v15  ;;  %v5574_v61 = vand.u32 4294901760, %v3738_v14  ;;  %v5576_v2 = vand.u32 4294901760, %v3772_v38  ;;  %v5583_v14 = vand.u32 4294901760, %v5582_v51 }
 0x147   : > { %v2728_v46 = vpack.c.bf16 %v921_v44, %v909_v20  ;;  %2713 = vmatprep.subr.bf16.mxu1 %v4324_v22  ;;  %2805 = vmatprep.subr.bf16.mxu0 %v3750_v25  ;;  %v5585_v27 = vand.u32 4294901760, %v3808_v60  ;;  %v5586_v38 = vand.u32 4294901760, %v3800_v56  ;;  %v5588_v43 = vand.u32 4294901760, %v3816_v1  ;;  %v5593_v60 = vld [vmem:[#allocation32_spill] sm:$0xff]  ;;  %v5597_v1 = vld [vmem:[#allocation41_spill] sm:$0xff] }
 0x148   : > { %v2732_v62 = vpack.c.bf16 %v945_v41, %v933_v47  ;;  %1277 = vmatmul.mubr.f32.vlgmr.msra.gmra.mrb[0].mxu0 %v3685_v49  ;;  %1100 = vmatprep.mubr.f32.mxu1 %v3562_v7  ;;  %v4512_v57 = vpack.c.bf16 %v5574_v61, %v5573_v24  ;;  %v4518_v22 = vpack.c.bf16 %v5576_v2, %v5575_v53  ;;  %v5589_v20 = vand.u32 4294901760, %v3867_v50  ;;  %v5595_v24 = vld [vmem:[#allocation47_spill] sm:$0xff]  ;;  %v5628_v25 = vld [vmem:[#allocation48_spill] sm:$0xff] }
 0x149   : > { %2807 = vmatpush1.bf16.msra.mxu0 %v3760_v34  ;;  %1400 = vmatprep.mubr.f32.mxu0 %v5572_v13  ;;  %v4539_v11 = vpack.c.bf16 %v5586_v38, %v5585_v27  ;;  %v5590_v44 = vand.u32 4294901760, %v3855_v39  ;;  %v5594_v13 = vand.u32 4294901760, %v5593_v60  ;;  %v5330_v61 = vand.u32 4294901760, %v5595_v24  ;;  %v5605_v27 = vld [vmem:[#allocation34_spill] sm:$0xff]  ;;  %v5606_v38 = vld [vmem:[#allocation51_spill] sm:$0xff]  ;;  %v5627_v34 = vld [vmem:[#allocation69_spill] sm:$0xff] }
 0x14a   : > { %2809 = vmatprep.subr.bf16.mxu0 %v3784_v42  ;;  %2715 = vmatpush1.bf16.msra.mxu1 %v4163_v16  ;;  %v5579_v16 = vand.u32 4294901760, %v3753_v30  ;;  %v5587_v30 = vand.u32 4294901760, %v3848_v29  ;;  %v5596_v29 = vld [vmem:[#allocation42_spill] sm:$0xff]  ;;  %v5598_v2 = vand.u32 4294901760, %v5597_v1  ;;  %v5601_v39 = vand.u32 4294901760, %v3957_v48  ;;  %v5607_v48 = vld [vmem:[#allocation53_spill] sm:$0xff] }
 0x14b   : > { %2717 = vmatprep.subr.bf16.mxu1 %v4408_v45  ;;  %v5580_v45 = vld [vmem:[#allocation25_spill] sm:$0xff]  ;;  %v4551_v41 = vpack.c.bf16 %v5590_v44, %v5589_v20  ;;  %v5332_v53 = vand.u32 4294901760, %v5596_v29  ;;  %v5602_v50 = vand.u32 4294901760, %v3959_v54  ;;  %v5334_v20 = vand.u32 4294901760, %v5607_v48  ;;  %v5610_v60 = vld [vmem:[#allocation54_spill] sm:$0xff]  ;;  %v5612_v1 = vld [vmem:[#allocation60_spill] sm:$0xff] }
 0x14c   : > { %v4525_v31 = vpack.c.bf16 %v5579_v16, %v5578_v19  ;;  %v5581_v21 = vand.u32 4294901760, %v5580_v45  ;;  %v4545_v52 = vpack.c.bf16 %v5588_v43, %v5587_v30  ;;  %v5599_v19 = vld [vmem:[#allocation37_spill] sm:$0xff]  ;;  %v5333_v30 = vand.u32 4294901760, %v5606_v38 }
 0x14d   : > { %2811 = vmatpush1.bf16.msra.mxu0 %v5577_v8  ;;  %v4571_v45 = vpack.c.bf16 %v5602_v50, %v5601_v39  ;;  %v950_v43 = vsub.f32 %v5595_v24, %v5330_v61  ;;  %v938_v54 = vsub.f32 %v5596_v29, %v5332_v53  ;;  %v5608_v44 = vld [vmem:[#allocation61_spill] sm:$0xff]  ;;  %v974_v39 = vsub.f32 %v5607_v48, %v5334_v20  ;;  %v5613_v50 = vld [vmem:[#allocation62_spill] sm:$0xff]  ;;  %v5614_v53 = vld [vmem:[#allocation67_spill] sm:$0xff] }
 0x14e   : > { %v4531_v47 = vpack.c.bf16 %v5583_v14, %v5581_v21  ;;  %2813 = vmatprep.subr.bf16.mxu0 %v5584_v4  ;;  %2719 = vmatpush1.bf16.msra.mxu1 %v4349_v37  ;;  %v5591_v37 = vld [vmem:[#allocation33_spill] sm:$0xff]  ;;  %v5603_v21 = vld [vmem:[#allocation52_spill] sm:$0xff]  ;;  %v5604_v14 = vld [vmem:[#allocation30_spill] sm:$0xff]  ;;  %vm5704_vm15 = vcmask 588800  }
 0x14f   : > { %2721 = vmatprep.subr.bf16.mxu1 %v2720_v6  ;;  %v5592_v58 = vand.u32 4294901760, %v5591_v37  ;;  %v5600_v6 = vand.u32 4294901760, %v5599_v19  ;;  %v5331_v51 = vand.u32 4294901760, %v5603_v21  ;;  %v956_v19 = vsub.f32 %v5606_v38, %v5333_v30  ;;  %v5615_v37 = vld [vmem:[#allocation39_spill] sm:$0xff]  ;;  %v5618_v30 = vld [vmem:[#allocation64_spill] sm:$0xff] }
 0x150   : > { %v5624_v8 = vld [vmem:[#allocation43_spill] sm:$0xff] }
 0x151   : > { %v4557_v56 = vpack.c.bf16 %v5594_v13, %v5592_v58  ;;  %v4565_v16 = vpack.c.bf16 %v5600_v6, %v5598_v2  ;;  %2815 = vmatpush1.bf16.msra.mxu0 %v5604_v14  ;;  %v5609_v58 = vld [vmem:[#allocation35_spill] sm:$0xff]  ;;  %v5611_v13 = vld [vmem:[#allocation40_spill] sm:$0xff]  ;;  %v951_v6 = vand.u32 4294901760, %v950_v43  ;;  %v5616_v2 = vand.u32 4294901760, %v5608_v44 }
 0x152   : > { %2817 = vmatprep.subr.bf16.mxu0 %v5605_v27  ;;  %2723 = vmatpush1.bf16.msra.mxu1 %v4429_v33  ;;  %v968_v33 = vsub.f32 %v5603_v21, %v5331_v51  ;;  %v939_v51 = vand.u32 4294901760, %v938_v54  ;;  %v5619_v27 = vld [vmem:[#allocation44_spill] sm:$0xff]  ;;  %v5620_v54 = vld [vmem:[#allocation66_spill] sm:$0xff] }
 0x153   : > { %2725 = vmatprep.subr.bf16.mxu1 %v2724_v26  ;;  %v957_v26 = vand.u32 4294901760, %v956_v19 }
 0x155   : > { %2819 = vmatpush1.bf16.msra.mxu0 %v5609_v58  ;;  %v2734_v58 = vpack.c.bf16 %v951_v6, %v939_v51  ;;  %v4632_v51 = vld [vmem:[%s5200_s3] sm:$0xff] }
 0x156   : > { %2821 = vmatprep.subr.bf16.mxu0 %v5611_v13  ;;  %2727 = vmatpush1.bf16.msra.mxu1 %v2726_v59  ;;  %v969_v59 = vand.u32 4294901760, %v968_v33  ;;  %v5617_v13 = vand.u32 4294901760, %v5610_v60  ;;  %v5621_v33 = vand.u32 4294901760, %v5612_v1  ;;  %5629 = vst [vmem:[#allocation25_spill] sm:$0xff] %v4632_v51 }
 0x157   : > { %2729 = vmatprep.subr.bf16.mxu1 %v2728_v46  ;;  %v992_v46 = vsub.f32 %v5608_v44, %v5616_v2  ;;  %v5622_v2 = vand.u32 4294901760, %v5613_v50 }
 0x158   : > { %v962_v43 = vsub.f32 %v5610_v60, %v5617_v13  ;;  %v980_v61 = vsub.f32 %v5612_v1, %v5621_v33  ;;  %v5623_v13 = vld [vmem:[#allocation68_spill] sm:$0xff] }
 0x159   : > { %2823 = vmatpush1.bf16.msra.mxu0 %v5615_v37  ;;  %v975_v37 = vand.u32 4294901760, %v974_v39  ;;  %v998_v14 = vsub.f32 %v5613_v50, %v5622_v2  ;;  %v5339_v4 = vand.u32 4294901760, %v5623_v13  ;;  %v993_v20 = vand.u32 4294901760, %v992_v46  ;;  %v5632_v2 = vld [vmem:[#allocation73_spill] sm:$0xff] }
 0x15a   : > { %2825 = vmatprep.subr.bf16.mxu0 %v5619_v27  ;;  %2731 = vmatpush1.bf16.msra.mxu1 %v4484_v12  ;;  %v2736_v12 = vpack.c.bf16 %v969_v59, %v957_v26  ;;  %v963_v42 = vand.u32 4294901760, %v962_v43  ;;  %v5626_v39 = vand.u32 4294901760, %v5618_v30  ;;  %v5630_v26 = vld [vmem:[#allocation74_spill] sm:$0xff]  ;;  %v981_v59 = vand.u32 4294901760, %v980_v61  ;;  %v5640_v27 = vld [vmem:[#allocation57_spill] sm:$0xff] }
 0x15b   : > { %2733 = vmatprep.subr.bf16.mxu1 %v2732_v62  ;;  %v5625_v62 = vand.u32 4294901760, %v5614_v53  ;;  %v5631_v46 = vand.u32 4294901760, %v5620_v54 }
 0x15c   : > { %v986_v33 = vsub.f32 %v5618_v30, %v5626_v39  ;;  %v999_v39 = vand.u32 4294901760, %v998_v14  ;;  %v2740_v61 = vpack.c.bf16 %v993_v20, %v981_v59  ;;  %v5638_v20 = vand.u32 4294901760, %v5630_v26 }
 0x15d   : > { %2827 = vmatpush1.bf16.msra.mxu0 %v5624_v8  ;;  %v1016_v19 = vsub.f32 %v5614_v53, %v5625_v62  ;;  %v1004_v43 = vsub.f32 %v5620_v54, %v5631_v46  ;;  %v3312_v62 = vmov 0   ;;  %v5634_v46 = vand.u32 4294901760, %v4351_v63 }
 0x15e   : > { %2829 = vmatprep.subr.bf16.mxu0 %v5628_v25  ;;  %2735 = vmatpush1.bf16.msra.mxu1 %v2734_v58  ;;  %v1022_v58 = vsub.f32 %v5623_v13, %v5339_v4  ;;  %v2738_v25 = vpack.c.bf16 %v975_v37, %v963_v42  ;;  %v987_v14 = vand.u32 4294901760, %v986_v33  ;;  %v5635_v53 = vand.u32 4294901760, %v5627_v34  ;;  %v5636_v13 = vld [vmem:[#allocation75_spill] sm:$0xff]  ;;  %v5637_v42 = vld [vmem:[#allocation56_spill] sm:$0xff] }
 0x15f   : > { %2737 = vmatprep.subr.bf16.mxu1 %v2736_v12  ;;  %3152 = vset.pattern.permute.xlu0 %v3312_v62  ;;  %v5633_v12 = vld [vmem:[#allocation49_spill] sm:$0xff]  ;;  %v1017_v8 = vand.u32 4294901760, %v1016_v19  ;;  %v1040_v62 = vsub.f32 %v4351_v63, %v5634_v46  ;;  %v1005_v6 = vand.u32 4294901760, %v1004_v43  ;;  %v1028_v19 = vsub.f32 %v5630_v26, %v5638_v20  ;;  %v5643_v63 = vld [vmem:[#allocation63_spill] sm:$0xff] }
 0x160   : > { %647 = vperm.xlu0 %3152, %v4632_v51   ;;  %v1010_v4 = vsub.f32 %v5627_v34, %v5635_v53  ;;  %v1023_v59 = vand.u32 4294901760, %v1022_v58  ;;  %v5639_v33 = vand.u32 4294901760, %v5632_v2  ;;  %v5343_v53 = vand.u32 4294901760, %v4445_v3 }
 0x161   : > { %2831 = vmatpush1.bf16.msra.mxu0 %v5633_v12  ;;  %v2742_v51 = vpack.c.bf16 %v999_v39, %v987_v14  ;;  %v5641_v37 = vand.u32 4294901760, %v4443_v5  ;;  %v5642_v12 = vand.u32 4294901760, %v5636_v13  ;;  %v1029_v39 = vand.u32 4294901760, %v1028_v19  ;;  %v5647_v19 = vld [vmem:[#allocation70_spill] sm:$0xff] }
 0x162   : > { %2833 = vmatprep.subr.bf16.mxu0 %v5637_v42  ;;  %2739 = vmatpush1.bf16.msra.mxu1 %v2738_v25  ;;  %v1046_v46 = vsub.f32 %v5632_v2, %v5639_v33  ;;  %v2744_v42 = vpack.c.bf16 %v1017_v8, %v1005_v6  ;;  %v1041_v25 = vand.u32 4294901760, %v1040_v62  ;;  %v5644_v14 = vand.u32 4294901760, %v4441_v40 }
 0x163   : > { %2741 = vmatprep.subr.bf16.mxu1 %v2740_v61  ;;  %v1064_v43 = vsub.f32 %v4443_v5, %v5641_v37  ;;  %v1011_v61 = vand.u32 4294901760, %v1010_v4  ;;  %v1034_v58 = vsub.f32 %v5636_v13, %v5642_v12  ;;  %v1070_v4 = vsub.f32 %v4445_v3, %v5343_v53  ;;  %v5645_v37 = vld [vmem:[#allocation65_spill] sm:$0xff] }
 0x164   : > { %v1052_v8 = vsub.f32 %v4441_v40, %v5644_v14  ;;  %v1047_v6 = vand.u32 4294901760, %v1046_v46  ;;  %v2748_v12 = vpack.c.bf16 %v1041_v25, %v1029_v39  ;;  %v1075_v20 = vand.u32 4294901760, %v4462_v28  ;;  %v5649_v39 = vld [vmem:[#allocation76_spill] sm:$0xff] }
 0x165   : > { %2835 = vmatpush1.bf16.msra.mxu0 %v5640_v27  ;;  %v2746_v62 = vpack.c.bf16 %v1023_v59, %v1011_v61  ;;  %v1065_v33 = vand.u32 4294901760, %v1064_v43  ;;  %v1071_v14 = vand.u32 4294901760, %v1070_v4  ;;  %v1081_v53 = vand.u32 4294901760, %v4490_v15  ;;  %v5648_v61 = vld [vmem:[#allocation71_spill] sm:$0xff]  ;;  %v5650_v4 = vld [vmem:[#allocation17_spill] sm:$0xff] }
 0x166   : > { %2837 = vmatprep.subr.bf16.mxu0 %v5643_v63  ;;  %2743 = vmatpush1.bf16.msra.mxu1 %v2742_v51  ;;  %v1035_v63 = vand.u32 4294901760, %v1034_v58  ;;  %v5646_v51 = vand.u32 4294901760, %v4447_v35  ;;  %v1053_v46 = vand.u32 4294901760, %v1052_v8  ;;  %v1076_v43 = vsub.f32 %v4462_v28, %v1075_v20  ;;  %v5692_v28 = vld [vmem:[#allocation34_spill] sm:$0xff] }
 0x167   : > { %2745 = vmatprep.subr.bf16.mxu1 %v2744_v42  ;;  %v1082_v8 = vsub.f32 %v4490_v15, %v1081_v53  ;;  %v5693_v15 = vld [vmem:[#allocation35_spill] sm:$0xff] }
 0x168   : > { %v1058_v42 = vsub.f32 %v4447_v35, %v5646_v51  ;;  %v2750_v59 = vpack.c.bf16 %v1047_v6, %v1035_v63  ;;  %v2752_v25 = vpack.c.bf16 %v1065_v33, %v1053_v46  ;;  %v1077_v63 = vand.u32 4294901760, %v1076_v43 }
 0x169   : > { %2839 = vmatpush1.bf16.msra.mxu0 %v5645_v37  ;;  %v1083_v6 = vand.u32 4294901760, %v1082_v8  ;;  %v5653_v33 = vand.u32 4294901760, %v3924_v9  ;;  %v5661_v9 = vand.u32 4294901760, %v5596_v29  ;;  %v5668_v43 = vand.u32 4294901760, %v5608_v44 }
 0x16a   : > { %2841 = vmatprep.subr.bf16.mxu0 %v5647_v19  ;;  %2747 = vmatpush1.bf16.msra.mxu1 %v2746_v62  ;;  %v1059_v58 = vand.u32 4294901760, %v1058_v42  ;;  %v5651_v62 = vmov 0.0  }
 0x16b   : > { %2749 = vmatprep.subr.bf16.mxu1 %v2748_v12  ;;  %v5652_v12 = vand.u32 4294901760, %v3685_v49 }
 0x16c   : > { %v2754_v51 = vpack.c.bf16 %v1071_v14, %v1059_v58  ;;  %v5671_v58 = vand.u32 4294901760, %v5620_v54  ;;  %v5681_v54 = vand.u32 4294901760, %v5632_v2  ;;  %v5691_v2 = vld [vmem:[#allocation30_spill] sm:$0xff] }
 0x16d   : > { %2843 = vmatpush1.bf16.msra.mxu0 %v5648_v61 }
 0x16e   : > { %2845 = vmatprep.subr.bf16.mxu0 %v5649_v39  ;;  %2751 = vmatpush1.bf16.msra.mxu1 %v2750_v59 }
 0x16f   : > { %2753 = vmatprep.subr.bf16.mxu1 %v2752_v25 }
 0x171   : > { %2847 = vmatpush1.bf16.msra.mxu0 %v4392_v17 }
 0x172   : > { %2849 = vmatprep.subr.bf16.mxu0 %v4451_v10  ;;  %2755 = vmatpush1.bf16.msra.mxu1 %v2754_v51  ;;  %v5672_v51 = vld [vmem:[#allocation67_spill] sm:$0xff] }
 0x173   : > { %1078 = vmatprep.subr.mxu1 %v1077_v63  ;;  %v5673_v8 = vand.u32 4294901760, %v5672_v51 }
 0x175   : > { %2851 = vmatpush1.bf16.msra.mxu0 %v4454_v55 }
 0x176   : > { %1380 = vmatprep.subr.mxu0 %v4449_v23  ;;  %1084 = vmatpush1.msra.mxu1 %v1083_v6  ;;  %v5677_v6 = vand.u32 4294901760, %v5630_v26  ;;  %v5685_v26 = vand.u32 4294901760, %v4445_v3  ;;  %v5690_v3 = vld [vmem:[#allocation28_spill] sm:$0xff] }
 0x177   : > { %1102 = vmatmul.mubr.f32.vlgmr.msra.gmra.mrb[0].mxu1 %v5650_v4 }
 0x178   : > { %1952 = vmatprep.mubr.f32.mxu1 %v5651_v62 }
 0x179   : > { %1382 = vmatpush1.msra.mxu0 %v4467_v32 }
 0x17a   : > { %2853 = vmatprep.subr.bf16.mxu0 %v4512_v57  ;;  %1404 = vmatmul.mubr.f32.vlgmr.msra.gmra.mrb[0].mxu0 %v5652_v12  ;;  %v5654_v57 = vld [vmem:[#allocation38_spill] sm:$0xff]  ;;  %v5678_v12 = vld [vmem:[#allocation72_spill] sm:$0xff] }
 0x17b   : > { %2855 = vmatpush1.bf16.msra.mxu0 %v4518_v22  ;;  %1625 = vmatprep.mubr.f32.mxu0 %v3562_v7  ;;  %v5655_v42 = vand.u32 4294901760, %v5654_v57  ;;  %v5656_v22 = vand.u32 4294901760, %v3955_v18  ;;  %v5663_v18 = vand.u32 4294901760, %v5606_v38  ;;  %v5670_v38 = vand.u32 4294901760, %v5613_v50 }
 0x17c   : > { %2857 = vmatprep.subr.bf16.mxu0 %v4525_v31  ;;  %v5657_v31 = vand.u32 4294901760, %v3965_v36  ;;  %v5664_v36 = vand.u32 4294901760, %v5603_v21  ;;  %v5680_v50 = vand.u32 4294901760, %v5636_v13  ;;  %v5686_v13 = vld [vmem:[#allocation20_spill] sm:$0xff] }
 0x17d   : > { %v2868_v49 = vpack.c.bf16 %v5655_v42, %v5653_v33  ;;  %v5679_v33 = vand.u32 4294901760, %v5678_v12  ;;  %v5682_v42 = vand.u32 4294901760, %v4441_v40  ;;  %v5687_v40 = vld [vmem:[#allocation21_spill] sm:$0xff] }
 0x17e   : > { %v2872_v46 = vpack.c.bf16 %v5657_v31, %v5656_v22  ;;  %v2880_v59 = vpack.c.bf16 %v5664_v36, %v5663_v18  ;;  %v2894_v57 = vpack.c.bf16 %v5681_v54, %v5680_v50  ;;  %v5684_v22 = vand.u32 4294901760, %v4447_v35  ;;  %v5689_v35 = vld [vmem:[#allocation27_spill] sm:$0xff] }
 0x17f   : > { %2859 = vmatpush1.bf16.msra.mxu0 %v4531_v47  ;;  %v5658_v47 = vld [vmem:[#allocation36_spill] sm:$0xff] }
 0x180   : > { %2861 = vmatprep.subr.bf16.mxu0 %v4539_v11  ;;  %v5659_v11 = vand.u32 4294901760, %v5658_v47  ;;  %v2898_v31 = vpack.c.bf16 %v5685_v26, %v5684_v22  ;;  %v5697_v47 = vld [vmem:[#allocation43_spill] sm:$0xff] }
 0x183   : > { %2863 = vmatpush1.bf16.msra.mxu0 %v4545_v52  ;;  %v5660_v52 = vand.u32 4294901760, %v4008_v0  ;;  %v5666_v0 = vand.u32 4294901760, %v5607_v48  ;;  %v5674_v48 = vand.u32 4294901760, %v5627_v34 }
 0x184   : > { %2865 = vmatprep.subr.bf16.mxu0 %v4551_v41 }
 0x185   : > { %v2876_v41 = vpack.c.bf16 %v5660_v52, %v5659_v11  ;;  %v5699_v11 = vld [vmem:[#allocation49_spill] sm:$0xff]  ;;  %v5700_v52 = vld [vmem:[#allocation56_spill] sm:$0xff] }
 0x187   : > { %2867 = vmatpush1.bf16.msra.mxu0 %v4557_v56  ;;  %v5662_v56 = vand.u32 4294901760, %v5595_v24  ;;  %v5669_v24 = vand.u32 4294901760, %v5618_v30  ;;  %v2892_v30 = vpack.c.bf16 %v5679_v33, %v5677_v6 }
 0x188   : > { %2869 = vmatprep.subr.bf16.mxu0 %v2868_v49  ;;  %v5683_v49 = vand.u32 4294901760, %v4443_v5  ;;  %v5688_v5 = vld [vmem:[#allocation24_spill] sm:$0xff] }
 0x189   : > { %v2878_v14 = vpack.c.bf16 %v5662_v56, %v5661_v9  ;;  %v2886_v21 = vpack.c.bf16 %v5670_v38, %v5669_v24 }
 0x18a   : > { %v2896_v34 = vpack.c.bf16 %v5683_v49, %v5682_v42 }
 0x18b   : > { %2871 = vmatpush1.bf16.msra.mxu0 %v4565_v16  ;;  %v5665_v16 = vand.u32 4294901760, %v5610_v60  ;;  %v2888_v60 = vpack.c.bf16 %v5673_v8, %v5671_v58 }
 0x18c   : > { %2873 = vmatprep.subr.bf16.mxu0 %v2872_v46  ;;  %v5696_v46 = vld [vmem:[#allocation44_spill] sm:$0xff] }
 0x18d   : > { %v2882_v25 = vpack.c.bf16 %v5666_v0, %v5665_v16  ;;  %v3313_v0 = vmov 1  }
 0x18e   : > { %3153 = vset.pattern.permute.xlu0 %v3313_v0 }
 0x18f   : > { %2875 = vmatpush1.bf16.msra.mxu0 %v4571_v45  ;;  %v5667_v45 = vand.u32 4294901760, %v5612_v1  ;;  %v5675_v1 = vld [vmem:[#allocation68_spill] sm:$0xff] }
 0x190   : > { %2877 = vmatprep.subr.bf16.mxu0 %v2876_v41  ;;  %v5676_v63 = vand.u32 4294901760, %v5675_v1  ;;  %v5701_v41 = vld [vmem:[#allocation63_spill] sm:$0xff] }
 0x191   : > { %v2884_v29 = vpack.c.bf16 %v5668_v43, %v5667_v45  ;;  %v5706_v43 = vld [vmem:[#allocation25_spill] sm:$0xff] }
 0x192   : > { %v2890_v44 = vpack.c.bf16 %v5676_v63, %v5674_v48 }
 0x193   : > { %2879 = vmatpush1.bf16.msra.mxu0 %v2878_v14 }
 0x194   : > { %2881 = vmatprep.subr.bf16.mxu0 %v2880_v59  ;;  %v5702_v59 = vld [vmem:[#allocation14_spill] sm:$0xff] }
 0x195   : > { %vm5703_vm12 = vcmp.lt.s32.totalorder %v5702_v59, 17  ;;  %vm5709_vm9 = vcmp.lt.s32.totalorder %v5702_v59, 16  ;;  %vm5727_vm14 = vcmp.lt.s32.totalorder %v5702_v59, 113 }
 0x196   : > { %vm5705_vm0 = vmmov %vm5703_vm12 }
 0x197   : > { %2883 = vmatpush1.bf16.msra.mxu0 %v2882_v25  ;;  %vm5710_vm4 = vmmov %vm5709_vm9 }
 0x198   : > { %2885 = vmatprep.subr.bf16.mxu0 %v2884_v29 }
 0x19b   : > { %2887 = vmatpush1.bf16.msra.mxu0 %v2886_v21 }
 0x19c   : > { %2889 = vmatprep.subr.bf16.mxu0 %v2888_v60 }
 0x19f   : > { %2891 = vmatpush1.bf16.msra.mxu0 %v2890_v44 }
 0x1a0   : > { %2893 = vmatprep.subr.bf16.mxu0 %v2892_v30 }
 0x1a3   : > { %2895 = vmatpush1.bf16.msra.mxu0 %v2894_v57 }
 0x1a4   : > { %2897 = vmatprep.subr.bf16.mxu0 %v2896_v34 }
 0x1a7   : > { %2899 = vmatpush1.bf16.msra.mxu0 %v2898_v31 }
 0x1a8   : > { %1605 = vmatprep.subr.mxu0 %v1075_v20  ;;  %v5695_v20 = vld [vmem:[#allocation39_spill] sm:$0xff] }
 0x1ab   : > { %1609 = vmatpush1.msra.mxu0 %v1081_v53  ;;  %v5694_v53 = vld [vmem:[#allocation40_spill] sm:$0xff] }
 0x1ac   : > { %2901 = vmatprep.subr.bf16.mxu0 %v5686_v13  ;;  %1627 = vmatmul.mubr.f32.vlgmr.msra.gmra.mrb[0].mxu0 %v5650_v4 }
 0x1ad   : > { %2903 = vmatpush1.bf16.msra.mxu0 %v5687_v40  ;;  %1748 = vmatprep.mubr.f32.mxu0 %v3562_v7  ;;  %v5698_v7 = vld [vmem:[#allocation48_spill] sm:$0xff] }
 0x1ae   : > { %2905 = vmatprep.subr.bf16.mxu0 %v5688_v5 }
 0x1b1   : > { %2907 = vmatpush1.bf16.msra.mxu0 %v5689_v35 }
 0x1b2   : > { %2909 = vmatprep.subr.bf16.mxu0 %v5690_v3  ;;  %v5735_v3 = vld [vmem:[#allocation45_spill] sm:$0xff] }
 0x1b5   : > { %2911 = vmatpush1.bf16.msra.mxu0 %v5691_v2 }
 0x1b6   : > { %2913 = vmatprep.subr.bf16.mxu0 %v5692_v28 }
 0x1b9   : > { %2915 = vmatpush1.bf16.msra.mxu0 %v5693_v15 }
 0x1ba   : > { %2917 = vmatprep.subr.bf16.mxu0 %v5694_v53 }
 0x1bd   : > { %2919 = vmatpush1.bf16.msra.mxu0 %v5695_v20  ;;  %v5719_v20 = vld [vmem:[#allocation15_spill] sm:$0xff] }
 0x1be   : > { %2921 = vmatprep.subr.bf16.mxu0 %v5696_v46  ;;  %vm5725_vm2 = vcmp.lt.s32.totalorder %v5719_v20, 15 }
 0x1c1   : > { %2923 = vmatpush1.bf16.msra.mxu0 %v5697_v47  ;;  %v5721_v47 = vld [vmem:[#allocation16_spill] sm:$0xff] }
 0x1c2   : > { %2925 = vmatprep.subr.bf16.mxu0 %v5698_v7  ;;  %vm5722_vm6 = vcmp.ge.s32.totalorder %v5721_v47, 1  ;;  %vm5726_vm11 = vcmp.lt.s32.totalorder %v5721_v47, 15 }
 0x1c5   : > { %2927 = vmatpush1.bf16.msra.mxu0 %v5699_v11 }
 0x1c6   : > { %2929 = vmatprep.subr.bf16.mxu0 %v5700_v52 }
 0x1c9   : > { %2931 = vmatpush1.bf16.msra.mxu0 %v5640_v27 }
 0x1ca   : > { %2933 = vmatprep.subr.bf16.mxu0 %v5701_v41 }
 0x1cd   : > { %2935 = vmatpush1.bf16.msra.mxu0 %v5645_v37 }
 0x1ce   : > { %2937 = vmatprep.subr.bf16.mxu0 %v5647_v19 }
 0x1d1   : > { %2939 = vmatpush1.bf16.msra.mxu0 %v5648_v61 }
 0x1d2   : > { %2941 = vmatprep.subr.bf16.mxu0 %v5649_v39 }
 0x1d5   : > { %2943 = vmatpush1.bf16.msra.mxu0 %v4392_v17 }
 0x1d6   : > { %2945 = vmatprep.subr.bf16.mxu0 %v4451_v10 }
 0x1d9   : > { %2947 = vmatpush1.bf16.msra.mxu0 %v4454_v55 }
 0x1da   : > { %1730 = vmatprep.subr.mxu0 %v4449_v23 }
 0x1dd   : > { %1732 = vmatpush1.msra.mxu0 %v4467_v32  ;;  %v1844_v32 = vld [vmem:[%s5199_s2] sm:$0xff] }
 0x1de   : > { %1750 = vmatmul.mubr.f32.vlgmr.msra.gmra.mrb[0].mxu0 %v5650_v4  ;;  %v1868_v25 = vsel %vm5704_vm15, %v1844_v32, 0 }
 0x1df   : > { %v648_v9 = vpop.permute.xlu0 %647  ;;  %v4847_v21 = vand.u32 4294901760, %v1868_v25 }
 0x1e1   : > { %v4860_v57 = vsub.f32 %v1868_v25, %v4847_v21 }
 0x1e3   : > { %v1955_v53 = vand.u32 4294901760, %v4860_v57 }
 0x24a   : > { %v1103_v27 = vpop.f32.mrb[0].mxu1 }
 0x24b   : > { %v1105_v37 = vpop.f32.mrb[1].mxu1  ;;  %v3044_v19 = vadd.f32 %v1103_v27, %v648_v9 }
 0x24c   : > { %v3046_v56 = vadd.f32 %v1105_v37, %v648_v9 }
 0x2b1   : > { %v1751_v61 = vpop.f32.mrb[0].mxu0 }
 0x2b2   : > { %v3045_v14 = vadd.f32 %v3044_v19, %v1751_v61  ;;  %v1753_v39 = vpop.f32.mrb[1].mxu0 }
 0x2b3   : > { %v3047_v18 = vadd.f32 %v3046_v56, %v1753_v39  ;;  %v4900_v39 = vsub.f32 %v4860_v57, %v1955_v53 }
 0x2b4   : > { %v4800_v17 = vmax.f32 %v3045_v14, 0.0 }
 0x2b5   : > { %v4806_v23 = vmax.f32 %v3047_v18, 0.0 }
 0x2b6   : > { %1772 = vrot.lane.b32.xlu0 %v4800_v17, %s3295_s14  ;;  %1762 = vrot.lane.b32.xlu1 %v4800_v17, %s3294_s13  ;;  %v1888_v5 = vand.u32 4294901760, %v4800_v17 }
 0x2b7   : > { %v1886_v35 = vand.u32 4294901760, %v4806_v23 }
 0x2b8   : > { %v4888_v37 = vsub.f32 %v4800_v17, %v1888_v5 }
 0x2b9   : > { %v4895_v14 = vsub.f32 %v4806_v23, %v1886_v35 }
 0x2ba   : > { %1782 = vrot.lane.b32.xlu0 %v4800_v17, %s3296_s28  ;;  %1764 = vrot.lane.b32.xlu1 %v4806_v23, %s3294_s13 }
 0x2bb   : > { %v2014_v29 = vand.u32 4294901760, %v4895_v14 }
 0x2be   : > { %1792 = vrot.lane.b32.xlu0 %v4800_v17, %s3299_s6  ;;  %1774 = vrot.lane.b32.xlu1 %v4806_v23, %s3295_s14 }
 0x2c2   : > { %1804 = vrot.lane.b32.xlu0 %v4800_v17, %s3300_s7  ;;  %1784 = vrot.lane.b32.xlu1 %v4806_v23, %s3296_s28  ;;  %s2652_s28 = sshll.u32 %s3481_s29, 4 }
 0x2c6   : > { %1814 = vrot.lane.b32.xlu0 %v4800_v17, %s3303_s12  ;;  %1794 = vrot.lane.b32.xlu1 %v4806_v23, %s3299_s6  ;;  %s2659_s6 = sshll.u32 %s3361_s19, 8  ;;  %s3314_s19 = smov [#allocation10]  }
 0x2c7   : > { %s5153_s25 = scalar_lea.hbm %s5201_s4, %s2659_s6  ;;  %s3217_s9 = sshll.u32 %s3314_s19, 4  ;;  %s3218_s9 = int_to_ptr.vmem [resolvable:$false] %s3217_s9 }
 0x2c8   : > { %s3219_s27 = scalar_lea.vmem %s3218_s9, 512 }
 0x2ca   : > { %1824 = vrot.lane.b32.xlu0 %v4800_v17, %s3304_s23  ;;  %1806 = vrot.lane.b32.xlu1 %v4806_v23, %s3300_s7  ;;  %s226_s7 = scalar_lea.vmem [#allocation10], %s2652_s28 }
 0x2ce   : > { %1834 = vrot.lane.b32.xlu0 %v4800_v17, %s3305_s21  ;;  %1816 = vrot.lane.b32.xlu1 %v4806_v23, %s3303_s12  ;;  %s2562_s12 = sshll.u32 %s226_s7, 4  ;;  %s5155_s12 = int_to_ptr.vmem [resolvable:$true] %s2562_s12 }
 0x2cf   : > { %s3213_s8 = scalar_lea.vmem %s5155_s12, 256  ;;  %p3220_p13 = scmp.lt.s32.totalorder %s5155_s12, %s3218_s9 }
 0x2d0   : > { %p3214_p6 = scmp.ne.s32.totalorder %s5155_s12, %s3213_s8  ;;  %p3221_p0 = scmp.lt.s32.totalorder %s3219_s27, %s3213_s8 }
 0x2d2   : > { %1826 = vrot.lane.b32.xlu1 %v4806_v23, %s3304_s23  ;;  %1864 = vperm.xlu0 %3153, %v5706_v43   ;;  %p3215_p9 = pnand %p3214_p6, %p3432_p8  ;;  %p3222_p5 = por %p3221_p0, %p3220_p13 }
 0x2d4   : > { %p3216_p12 = pneg %p3215_p9 }
 0x2d6   : > { %1836 = vrot.lane.b32.xlu1 %v4806_v23, %s3305_s21  ;;  %p3223_p10 = pnand %p3222_p5, %p3216_p12 }
 0x328   : > { %v1773_v10 = vpop.permute.xlu0 %1772  ;;  %v1763_v55 = vpop.permute.xlu1 %1762 }
 0x32c   : > { %v1783_v4 = vpop.permute.xlu0 %1782  ;;  %v1765_v36 = vpop.permute.xlu1 %1764 }
 0x32d   : > { %v1767_v16 = vsel %vm5703_vm12, %v1765_v36, %v1763_v55  ;;  %v1766_v45 = vsel %vm5705_vm0, %v1763_v55, %v1765_v36  ;;  %vm5728_vm12 = vmmov %vm5727_vm14 }
 0x32e   : > { %v1768_v24 = vsel %vm3766_vm7, %v1767_v16, 0.0  ;;  %v1769_v51 = vsel %vm3778_vm10, %v1766_v45, 0.0  ;;  %vm5713_vm7 = vcmp.lt.s32.totalorder %v5702_v59, 15 }
 0x32f   : > { %v1872_v12 = vand.u32 4294901760, %v1768_v24  ;;  %v1870_v50 = vand.u32 4294901760, %v1769_v51  ;;  %vm5714_vm10 = vmmov %vm5713_vm7 }
 0x330   : > { %v1775_v38 = vpop.permute.xlu1 %1774  ;;  %v1793_v8 = vpop.permute.xlu0 %1792 }
 0x331   : > { %v1776_v60 = vsel %vm5709_vm9, %v1773_v10, %v1775_v38  ;;  %v1777_v48 = vsel %vm5710_vm4, %v1775_v38, %v1773_v10  ;;  %v4890_v19 = vsub.f32 %v1769_v51, %v1870_v50  ;;  %v4910_v32 = vsub.f32 %v1768_v24, %v1872_v12 }
 0x332   : > { %v1778_v63 = vsel %vm3697_vm5, %v1777_v48, 0.0  ;;  %v1779_v6 = vsel %vm3678_vm1, %v1776_v60, 0.0  ;;  %vm5717_vm1 = vcmp.lt.s32.totalorder %v5702_v59, 1  ;;  %v2020_v24 = vand.u32 4294901760, %v4888_v37 }
 0x333   : > { %v1874_v33 = vand.u32 4294901760, %v1779_v6  ;;  %v1876_v30 = vand.u32 4294901760, %v1778_v63  ;;  %vm5718_vm5 = vmmov %vm5717_vm1  ;;  %v1966_v60 = vand.u32 4294901760, %v4890_v19  ;;  %v1972_v48 = vand.u32 4294901760, %v4910_v32 }
 0x334   : > { %v1785_v54 = vpop.permute.xlu1 %1784  ;;  %v1805_v26 = vpop.permute.xlu0 %1804  ;;  %vm5733_vm9 = vcmp.lt.s32.totalorder %v5702_v59, 112 }
 0x335   : > { %v4862_v42 = vpack.c.bf16 %v1876_v30, %v1872_v12  ;;  %v1786_v49 = vsel %vm5713_vm7, %v1783_v4, %v1785_v54  ;;  %v1787_v34 = vsel %vm5714_vm10, %v1785_v54, %v1783_v4  ;;  %v4868_v22 = vpack.c.bf16 %v1874_v33, %v1870_v50  ;;  %vm5734_vm4 = vmmov %vm5733_vm9 }
 0x336   : > { %v1788_v13 = vsel %vm3842_vm3, %v1787_v34, 0.0  ;;  %v1789_v2 = vsel %vm3830_vm13, %v1786_v49, 0.0  ;;  %vm5720_vm3 = vcmp.ge.s32.totalorder %v5719_v20, 1  ;;  %v4902_v18 = vsub.f32 %v1778_v63, %v1876_v30  ;;  %v5729_v30 = vld [vmem:[#allocation55_spill] sm:$0xff]  ;;  %v5731_v34 = vld [vmem:[#allocation50_spill] sm:$0xff] }
 0x337   : > { %2949 = vmatprep.subr.bf16.mxu1 %v4868_v22  ;;  %v1880_v11 = vand.u32 4294901760, %v1788_v13  ;;  %v1878_v27 = vand.u32 4294901760, %v1789_v2  ;;  %vm5723_vm13 = vcmp.lt.s32.totalorder %v5702_v59, 127  ;;  %v4912_v4 = vsub.f32 %v1779_v6, %v1874_v33 }
 0x338   : > { %v1795_v40 = vpop.permute.xlu1 %1794  ;;  %2951 = vmatpush1.bf16.msra.mxu1 %v4862_v42  ;;  %v1815_v56 = vpop.permute.xlu0 %1814  ;;  %vm5724_vm8 = vmmov %vm5723_vm13  ;;  %v1984_v38 = vand.u32 4294901760, %v4902_v18  ;;  %vm5730_vm15 = vnez %v5729_v30  ;;  %vm5732_vm0 = vnez %v5731_v34  ;;  %vm5736_vm7 = vnez %v5735_v3  ;;  %v5741_v34 = vld [vmem:[#allocation59_spill] sm:$0xff] }
 0x339   : > { %v1796_v28 = vsel %vm5717_vm1, %v1793_v8, %v1795_v40  ;;  %v1797_v15 = vsel %vm5718_vm5, %v1795_v40, %v1793_v8  ;;  %v1957_v8 = vand.u32 4294901760, %v4900_v39  ;;  %v1978_v1 = vand.u32 4294901760, %v4912_v4 }
 0x33a   : > { %v1798_v46 = vsel %vm5720_vm3, %v1797_v15, 0.0  ;;  %v1799_v7 = vsel %vm5722_vm6, %v1796_v28, 0.0  ;;  %v4937_v6 = vsub.f32 %v1789_v2, %v1878_v27  ;;  %v5737_v28 = vld [vmem:[#allocation46_spill] sm:$0xff]  ;;  %vm5739_vm1 = vcmp.lt.s32.totalorder %v5702_v59, 111 }
 0x33b   : > { %v1882_v52 = vand.u32 4294901760, %v1799_v7  ;;  %v1884_v41 = vand.u32 4294901760, %v1798_v46  ;;  %vm5738_vm10 = vnez %v5737_v28  ;;  %vm5740_vm5 = vmmov %vm5739_vm1  ;;  %vm5742_vm3 = vnez %v5741_v34 }
 0x33c   : > { %v1807_v9 = vpop.permute.xlu1 %1806  ;;  %v1825_v63 = vpop.permute.xlu0 %1824 }
 0x33d   : > { %v4892_v61 = vpack.c.bf16 %v1884_v41, %v1880_v11  ;;  %v1808_v17 = vsel %vm5723_vm13, %v1805_v26, %v1807_v9  ;;  %v1809_v10 = vsel %vm5724_vm8, %v1807_v9, %v1805_v26  ;;  %v4908_v55 = vpack.c.bf16 %v1882_v52, %v1878_v27 }
 0x33e   : > { %v1810_v23 = vsel %vm5725_vm2, %v1808_v17, 0.0  ;;  %v1811_v36 = vsel %vm5726_vm11, %v1809_v10, 0.0  ;;  %v4918_v16 = vsub.f32 %v1799_v7, %v1882_v52  ;;  %v4940_v33 = vsub.f32 %v1798_v46, %v1884_v41 }
 0x33f   : > { %v1890_v0 = vand.u32 4294901760, %v1811_v36  ;;  %v1892_v25 = vand.u32 4294901760, %v1810_v23  ;;  %2953 = vmatprep.subr.bf16.mxu1 %v4908_v55  ;;  %v1979_v7 = vsub.f32 %v4912_v4, %v1978_v1  ;;  %v1990_v52 = vand.u32 4294901760, %v4937_v6 }
 0x340   : > { %v1817_v45 = vpop.permute.xlu1 %1816  ;;  %2955 = vmatpush1.bf16.msra.mxu1 %v4892_v61  ;;  %v2002_v12 = vand.u32 4294901760, %v4918_v16  ;;  %v1967_v27 = vsub.f32 %v4890_v19, %v1966_v60  ;;  %v1835_v17 = vpop.permute.xlu0 %1834 }
 0x341   : > { %v1818_v43 = vsel %vm5727_vm14, %v1815_v56, %v1817_v45  ;;  %v4927_v58 = vpack.c.bf16 %v1892_v25, %v1888_v5  ;;  %v1819_v51 = vsel %vm5728_vm12, %v1817_v45, %v1815_v56  ;;  %v4935_v44 = vpack.c.bf16 %v1890_v0, %v1886_v35 }
 0x342   : > { %v1820_v50 = vsel %vm5730_vm15, %v1818_v43, 0.0  ;;  %v4944_v49 = vsub.f32 %v1811_v36, %v1890_v0  ;;  %v1821_v26 = vsel %vm5732_vm0, %v1819_v51, 0.0  ;;  %v1985_v5 = vsub.f32 %v4902_v18, %v1984_v38 }
 0x343   : > { %2957 = vmatprep.subr.bf16.mxu1 %v4935_v44  ;;  %v4956_v35 = vsub.f32 %v1788_v13, %v1880_v11  ;;  %v1896_v20 = vand.u32 4294901760, %v1820_v50  ;;  %v2008_v13 = vand.u32 4294901760, %v4940_v33  ;;  %v1894_v11 = vand.u32 4294901760, %v1821_v26 }
 0x344   : > { %v1827_v54 = vpop.permute.xlu1 %1826  ;;  %2959 = vmatpush1.bf16.msra.mxu1 %v4927_v58  ;;  %v5344_v9 = vand.u32 4294901760, %v4944_v49  ;;  %v4972_v56 = vsub.f32 %v1810_v23, %v1892_v25  ;;  %v2003_v36 = vsub.f32 %v4918_v16, %v2002_v12  ;;  %v1973_v23 = vsub.f32 %v4910_v32, %v1972_v48 }
 0x345   : > { %v1828_v31 = vsel %vm5733_vm9, %v1825_v63, %v1827_v54  ;;  %v1829_v40 = vsel %vm5734_vm4, %v1827_v54, %v1825_v63  ;;  %v1986_v25 = vand.u32 4294901760, %v1985_v5  ;;  %v1996_v63 = vand.u32 4294901760, %v4956_v35 }
 0x346   : > { %v1830_v2 = vsel %vm5736_vm7, %v1828_v31, 0.0  ;;  %v1831_v15 = vsel %vm5738_vm10, %v1829_v40, 0.0  ;;  %v1980_v30 = vand.u32 4294901760, %v1979_v7  ;;  %v4991_v54 = vsub.f32 %v1821_v26, %v1894_v11  ;;  %v5743_v40 = vld [vmem:[#allocation58_spill] sm:$0xff] }
 0x347   : > { %v1898_v46 = vand.u32 4294901760, %v1831_v15  ;;  %v1900_v47 = vand.u32 4294901760, %v1830_v2  ;;  %vm5744_vm6 = vnez %v5743_v40  ;;  %v1991_v59 = vsub.f32 %v4937_v6, %v1990_v52 }
 0x348   : > { %v1837_v41 = vpop.permute.xlu1 %1836  ;;  %v2009_v5 = vsub.f32 %v4940_v33, %v2008_v13  ;;  %v5345_v28 = vand.u32 4294901760, %v4972_v56  ;;  %v1968_v7 = vand.u32 4294901760, %v1967_v27 }
 0x349   : > { %v4974_v10 = vpack.c.bf16 %v1900_v47, %v1896_v20  ;;  %v4979_v0 = vsub.f32 %v1831_v15, %v1898_v46  ;;  %v1838_v45 = vsel %vm5739_vm1, %v1835_v17, %v1837_v41  ;;  %v1839_v43 = vsel %vm5740_vm5, %v1837_v41, %v1835_v17 }
 0x34a   : > { %v4985_v51 = vpack.c.bf16 %v1898_v46, %v1894_v11  ;;  %v1840_v31 = vsel %vm5742_vm3, %v1838_v45, 0.0  ;;  %v1841_v3 = vsel %vm5744_vm6, %v1839_v43, 0.0  ;;  %v5005_v26 = vsub.f32 %v1830_v2, %v1900_v47 }
 0x34b   : > { %v5007_v15 = vand.u32 4294901760, %v1841_v3  ;;  %v5346_v46 = vand.u32 4294901760, %v4979_v0  ;;  %v2004_v11 = vand.u32 4294901760, %v2003_v36  ;;  %v2027_v41 = vsub.f32 %v4944_v49, %v5344_v9 }
 0x34c   : > { %2961 = vmatprep.subr.bf16.mxu1 %v4985_v51  ;;  %v1974_v17 = vand.u32 4294901760, %v1973_v23  ;;  %v1997_v45 = vsub.f32 %v4956_v35, %v1996_v63  ;;  %v5017_v43 = vsub.f32 %v1820_v50, %v1896_v20  ;;  %v5019_v2 = vand.u32 4294901760, %v1840_v31 }
 0x34d   : > { %2963 = vmatpush1.bf16.msra.mxu1 %v4974_v10  ;;  %v5348_v47 = vand.u32 4294901760, %v4991_v54  ;;  %v2964_v34 = vpack.c.bf16 %v1980_v30, %v1968_v7  ;;  %v1992_v27 = vand.u32 4294901760, %v1991_v59  ;;  %v2015_v36 = vsub.f32 %v4895_v14, %v2014_v29 }
 0x34e   : > { %1903 = vmatprep.subr.mxu1 %v5007_v15  ;;  %v2010_v40 = vand.u32 4294901760, %v2009_v5  ;;  %v2033_v23 = vsub.f32 %v4972_v56, %v5345_v28  ;;  %v5347_v50 = vand.u32 4294901760, %v5005_v26  ;;  %v2966_v20 = vpack.c.bf16 %v1986_v25, %v1974_v17 }
 0x34f   : > { %v5032_v9 = vsub.f32 %v1841_v3, %v5007_v15  ;;  %v2968_v30 = vpack.c.bf16 %v2004_v11, %v1992_v27  ;;  %v2028_v59 = vand.u32 4294901760, %v2027_v41  ;;  %v2051_v5 = vsub.f32 %v4979_v0, %v5346_v46 }
 0x350   : > { %v1998_v7 = vand.u32 4294901760, %v1997_v45  ;;  %v2044_v28 = vand.u32 4294901760, %v5017_v43  ;;  %v2021_v25 = vsub.f32 %v4888_v37, %v2020_v24  ;;  %v2016_v3 = vand.u32 4294901760, %v2015_v36 }
 0x351   : > { %1905 = vmatpush1.msra.mxu1 %v5019_v2  ;;  %v2039_v39 = vsub.f32 %v4991_v54, %v5348_v47  ;;  %v2057_v11 = vsub.f32 %v5005_v26, %v5347_v50  ;;  %v5051_v41 = vsub.f32 %v1840_v31, %v5019_v2  ;;  %v2062_v27 = vand.u32 4294901760, %v5032_v9 }
 0x352   : > { %2965 = vmatprep.subr.bf16.mxu1 %v2964_v34  ;;  %1958 = vmatmul.mubr.f32.vlgmr.msra.gmra.mrb[2].mxu1 %v1957_v8  ;;  %v2034_v8 = vand.u32 4294901760, %v2033_v23  ;;  %v2970_v17 = vpack.c.bf16 %v2010_v40, %v1998_v7  ;;  %v2972_v45 = vpack.c.bf16 %v2028_v59, %v2016_v3  ;;  %v2052_v34 = vand.u32 4294901760, %v2051_v5 }
 0x353   : > { %2967 = vmatpush1.bf16.msra.mxu1 %v2966_v20  ;;  %2118 = vmatprep.mubr.f32.mxu1 %v5651_v62  ;;  %v2045_v36 = vsub.f32 %v5017_v43, %v2044_v28  ;;  %v2022_v20 = vand.u32 4294901760, %v2021_v25  ;;  %v2040_v23 = vand.u32 4294901760, %v2039_v39  ;;  %v2068_v46 = vand.u32 4294901760, %v5051_v41 }
 0x354   : > { %2969 = vmatprep.subr.bf16.mxu1 %v2968_v30  ;;  %v2058_v30 = vand.u32 4294901760, %v2057_v11  ;;  %v2063_v31 = vsub.f32 %v5032_v9, %v2062_v27  ;;  %v2980_v3 = vpack.c.bf16 %v4912_v4, %v4890_v19  ;;  %v2982_v39 = vpack.c.bf16 %v4902_v18, %v4910_v32 }
 0x355   : > { %v2974_v50 = vpack.c.bf16 %v2034_v8, %v2022_v20  ;;  %v2976_v47 = vpack.c.bf16 %v2052_v34, %v2040_v23  ;;  %v2046_v40 = vand.u32 4294901760, %v2045_v36  ;;  %v2069_v5 = vsub.f32 %v5051_v41, %v2068_v46 }
 0x356   : > { %v2064_v7 = vand.u32 4294901760, %v2063_v31  ;;  %v2988_v8 = vpack.c.bf16 %v4944_v49, %v4895_v14  ;;  %v2990_v11 = vpack.c.bf16 %v4972_v56, %v4888_v37  ;;  %v3012_v34 = vpack.c.bf16 %v1978_v1, %v1966_v60 }
 0x357   : > { %2971 = vmatpush1.bf16.msra.mxu1 %v2970_v17  ;;  %v2978_v59 = vpack.c.bf16 %v2058_v30, %v2046_v40  ;;  %v2070_v25 = vand.u32 4294901760, %v2069_v5  ;;  %v2992_v17 = vpack.c.bf16 %v4979_v0, %v4991_v54  ;;  %v3014_v36 = vpack.c.bf16 %v1984_v38, %v1972_v48 }
 0x358   : > { %2973 = vmatprep.subr.bf16.mxu1 %v2972_v45  ;;  %v2994_v45 = vpack.c.bf16 %v5005_v26, %v5017_v43  ;;  %v3016_v20 = vpack.c.bf16 %v2002_v12, %v1990_v52  ;;  %v3018_v19 = vpack.c.bf16 %v2008_v13, %v1996_v63  ;;  %v5745_v18 = vand.u32 4294901760, %v4944_v49 }
 0x359   : > { %v5747_v4 = vand.u32 4294901760, %v4991_v54  ;;  %v5749_v14 = vand.u32 4294901760, %v5005_v26 }
 0x35b   : > { %2975 = vmatpush1.bf16.msra.mxu1 %v2974_v50  ;;  %v2986_v50 = vpack.c.bf16 %v4940_v33, %v4956_v35  ;;  %v3026_v60 = vpack.c.bf16 %v5749_v14, %v2044_v28 }
 0x35c   : > { %2977 = vmatprep.subr.bf16.mxu1 %v2976_v47  ;;  %v2984_v47 = vpack.c.bf16 %v4918_v16, %v4937_v6  ;;  %v5748_v16 = vand.u32 4294901760, %v4979_v0 }
 0x35e   : > { %v3024_v38 = vpack.c.bf16 %v5748_v16, %v5747_v4 }
 0x35f   : > { %2979 = vmatpush1.bf16.msra.mxu1 %v2978_v59 }
 0x360   : > { %2065 = vmatprep.subr.mxu1 %v2064_v7 }
 0x363   : > { %2071 = vmatpush1.msra.mxu1 %v2070_v25 }
 0x364   : > { %2981 = vmatprep.subr.bf16.mxu1 %v2980_v3  ;;  %2120 = vmatmul.mubr.f32.vlgmr.msra.gmra.mrb[2].mxu1 %v4847_v21 }
 0x365   : > { %2983 = vmatpush1.bf16.msra.mxu1 %v2982_v39  ;;  %2226 = vmatprep.mubr.f32.mxu1 %v5651_v62 }
 0x366   : > { %2985 = vmatprep.subr.bf16.mxu1 %v2984_v47 }
 0x369   : > { %2987 = vmatpush1.bf16.msra.mxu1 %v2986_v50 }
 0x36a   : > { %2989 = vmatprep.subr.bf16.mxu1 %v2988_v8 }
 0x36d   : > { %2991 = vmatpush1.bf16.msra.mxu1 %v2990_v11 }
 0x36e   : > { %2993 = vmatprep.subr.bf16.mxu1 %v2992_v17 }
 0x371   : > { %2995 = vmatpush1.bf16.msra.mxu1 %v2994_v45 }
 0x372   : > { %2176 = vmatprep.subr.mxu1 %v5032_v9 }
 0x375   : > { %2179 = vmatpush1.msra.mxu1 %v5051_v41 }
 0x376   : > { %2997 = vmatprep.subr.bf16.mxu1 %v4868_v22  ;;  %2229 = vmatmul.mubr.f32.vlgmr.msra.gmra.mrb[2].mxu1 %v4860_v57  ;;  %v3020_v57 = vpack.c.bf16 %v5745_v18, %v2014_v29 }
 0x377   : > { %2999 = vmatpush1.bf16.msra.mxu1 %v4862_v42  ;;  %2317 = vmatprep.mubr.f32.mxu1 %v5651_v62 }
 0x378   : > { %3001 = vmatprep.subr.bf16.mxu1 %v4908_v55 }
 0x37b   : > { %3003 = vmatpush1.bf16.msra.mxu1 %v4892_v61 }
 0x37c   : > { %3005 = vmatprep.subr.bf16.mxu1 %v4935_v44 }
 0x37f   : > { %3007 = vmatpush1.bf16.msra.mxu1 %v4927_v58 }
 0x380   : > { %3009 = vmatprep.subr.bf16.mxu1 %v4985_v51 }
 0x383   : > { %3011 = vmatpush1.bf16.msra.mxu1 %v4974_v10 }
 0x384   : > { %2268 = vmatprep.subr.mxu1 %v5007_v15 }
 0x387   : > { %2270 = vmatpush1.msra.mxu1 %v5019_v2 }
 0x388   : > { %3013 = vmatprep.subr.bf16.mxu1 %v3012_v34  ;;  %2321 = vmatmul.mubr.f32.vlgmr.msra.gmra.mrb[2].mxu1 %v1955_v53  ;;  %v5746_v53 = vand.u32 4294901760, %v4972_v56 }
 0x389   : > { %3015 = vmatpush1.bf16.msra.mxu1 %v3014_v36  ;;  %2445 = vmatprep.mubr.f32.mxu1 %v5651_v62 }
 0x38a   : > { %3017 = vmatprep.subr.bf16.mxu1 %v3016_v20  ;;  %v3022_v32 = vpack.c.bf16 %v5746_v53, %v2020_v24 }
 0x38d   : > { %3019 = vmatpush1.bf16.msra.mxu1 %v3018_v19 }
 0x38e   : > { %3021 = vmatprep.subr.bf16.mxu1 %v3020_v57 }
 0x391   : > { %3023 = vmatpush1.bf16.msra.mxu1 %v3022_v32 }
 0x392   : > { %3025 = vmatprep.subr.bf16.mxu1 %v3024_v38 }
 0x395   : > { %3027 = vmatpush1.bf16.msra.mxu1 %v3026_v60 }
 0x396   : > { %2394 = vmatprep.subr.mxu1 %v2062_v27 }
 0x399   : > { %2398 = vmatpush1.msra.mxu1 %v2068_v46 }
 0x39a   : > { %3029 = vmatprep.subr.bf16.mxu1 %v4868_v22  ;;  %2447 = vmatmul.mubr.f32.vlgmr.msra.gmra.mrb[2].mxu1 %v4847_v21 }
 0x39b   : > { %3031 = vmatpush1.bf16.msra.mxu1 %v4862_v42  ;;  %2535 = vmatprep.mubr.f32.mxu1 %v5651_v62  ;;  %v1865_v62 = vpop.permute.xlu0 %1864 }
 0x39c   : > { %3033 = vmatprep.subr.bf16.mxu1 %v4908_v55 }
 0x39f   : > { %3035 = vmatpush1.bf16.msra.mxu1 %v4892_v61 }
 0x3a0   : > { %3037 = vmatprep.subr.bf16.mxu1 %v4935_v44 }
 0x3a3   : > { %3039 = vmatpush1.bf16.msra.mxu1 %v4927_v58 }
 0x3a4   : > { %3041 = vmatprep.subr.bf16.mxu1 %v4985_v51 }
 0x3a7   : > { %3043 = vmatpush1.bf16.msra.mxu1 %v4974_v10 }
 0x3a8   : > { %2486 = vmatprep.subr.mxu1 %v5007_v15 }
 0x3ab   : > { %2488 = vmatpush1.msra.mxu1 %v5019_v2 }
 0x3ac   : > { %2537 = vmatmul.mubr.f32.vlgmr.msra.gmra.mrb[2].mxu1 %v4847_v21 }
 0x47f   : > { %v2538_v42 = vpop.f32.mrb[2].mxu1 }
 0x480   : > { %v3048_v22 = vadd.f32 %v2538_v42, %v1865_v62  ;;  %v2540_v37 = vpop.f32.mrb[3].mxu1 }
 0x481   : > { %v3049_v61 = vadd.f32 %v2540_v37, %v1865_v62 }
 0x482   : > { %v2543_v55 = vmax.f32 %v3048_v22, 0.0 }
 0x483   : > { %v2544_v29 = vmax.f32 %v3049_v61, 0.0 }
 0x484   : > { %2545 = vst [vmem:[%s226_s7] sm:$0xff] %v2543_v55 }
 0x485   : > { %2546 = vst [vmem:[%s226_s7 + $0x8] sm:$0xff] %v2544_v29 }
 0x486   : > { %3226 = shalt.err (!%p3223_p10)
}
 0x487   : > { %s3227_s29 = scalar_lea.hbm %s5153_s25, 256  ;;  %s3231_s11 = scalar_lea.hbm %s5201_s4, 512 }
 0x488   : > { %p3228_p1 = scmp.ne.s32.totalorder %s5153_s25, %s3227_s29  ;;  %p3232_p3 = scmp.lt.u32.totalorder %s5153_s25, %s5201_s4 }
 0x489   : > { %p3233_p4 = scmp.lt.u32.totalorder %s3231_s11, %s3227_s29  ;;  %p3235_p6 = scmp.lt.u32.totalorder %s3227_s29, %s5153_s25 }
 0x48a   : > { %p3229_p2 = pnand %p3228_p1, %p3432_p8 }
 0x48b   : > { %p3234_p11 = por %p3233_p4, %p3232_p3 }
 0x48c   : > { %p3230_p7 = pneg %p3229_p2 }
 0x48d   : > { %p3236_p9 = por %p3235_p6, %p3234_p11 }
 0x48f   : > { %p3237_p12 = pnand %p3236_p9, %p3230_p7 }
 0x491   : > { %3240 = shalt.err (!%p3237_p12)
}
 0x492   : > { %3074 = dma.vmem_to_hbm [thread:$0]  (%p3432_p8), %s5155_s12, 256, %s5153_s25, %s2548_s30  }
 0x493 PF: > { %s2574_s28 = sand.u32 1, %s3271_s15   ;;  %p5750_p13 = scmp.ne.s32.totalorder %s5350_s22, 0 }
 0x494   : > { %p5751_p0 = scmp.ge.s32.totalorder %s3283_s18, 2  ;;  %s2575_s6 = scalar_lea.sflag [#allocation7], %s2574_s28 }
 0x496   : > { %p3085_p5 = pnand %p5751_p0, %p5750_p13 }
 0x498   : > { %3266 = dma.done.wait (!%p3085_p5), %s2575_s6, 256  }
 0x499   : > { %3268 = vsyncadd (!%p3085_p5), %s2575_s6, 4294967040  ;;  %p18_p10 = scmp.ge.s32.totalorder %s3388_s26, 4   ;;  %s5752_s15 = smov %s3275_s16 }
 0x49a   : > { %s5753_s16 = smov %s3279_s17  ;;  %s5754_s17 = smov %s3424_s20 }
 0x49b   : > { %s5755_s18 = smov %s3388_s26  ;;  %20 = sbr.rel (!%p18_p10) target bundleno = 6 (0x6), region = 85 }
 0x4a2   :  { %2580 = vsyncpa [#allocation6], 1 }
 0x4a3   :  { %2582 = vsyncpa [#allocation6 + $0x1], 1 }
 0x4a4   :  { %2583 = vsyncpa [#allocation9], 1 }
 0x4a5   :  { %2584 = vsyncpa [#allocation7], 1 }
 0x4a6   :  { %2586 = vsyncpa [#allocation7 + $0x1], 1 }

</bundles_post_ra>
